<compile_context>
chip_gen: v7x
topology: tpu7x:2x2x1
jax: 0.10.0
libtpu: 0.0.40
codegen_flags: <defaults>
</compile_context>

<pallas_src>
import functools
import math

import jax
import jax.numpy as jnp
from jax.experimental import pallas as pl
from jax.experimental.pallas import tpu as pltpu


def _self_attention_kernel(q_ref, k_ref, v_ref, mask_ref,
                           wq_ref, wk_ref, wv_ref, wo_ref, bo_ref,
                           o_ref, *, num_heads):
    # q/k/v_ref : VMEM (Bb, T, E)   block of batch elements
    # mask_ref  : VMEM (T, T) int8 (shared) or (Bb, T, T) int8 (per-batch)
    # wq/wk/wv  : VMEM (E, E)  W.T (sqrt(C) folded into wq), compute dtype
    # wo_ref    : VMEM (H, C, E)   fc weight split per head, compute dtype
    # bo_ref    : VMEM (1, E) f32
    # o_ref     : VMEM (Bb, T, E)
    H = num_heads
    Bb, T, E = q_ref.shape
    C = E // H
    cdt = wq_ref.dtype                       # MXU compute dtype (bf16 default)

    # ---- fused QKV projections on the whole (Bb*T, E) slab ----------------
    # (block_b*T rows keep the MXU M-dimension busy; f32 accumulate, then cast
    #  once to the compute dtype since the results only feed the MXU again.)
    q2 = q_ref[...].reshape(Bb * T, E).astype(cdt)
    k2 = k_ref[...].reshape(Bb * T, E).astype(cdt)
    v2 = v_ref[...].reshape(Bb * T, E).astype(cdt)
    q_proj = jnp.dot(q2, wq_ref[...], preferred_element_type=jnp.float32).astype(cdt)
    k_proj = jnp.dot(k2, wk_ref[...], preferred_element_type=jnp.float32).astype(cdt)
    v_proj = jnp.dot(v2, wv_ref[...], preferred_element_type=jnp.float32).astype(cdt)

    # ---- mask -> additive bias, computed once per grid step ----------------
    # wrapper normalises the mask to {0, 1} int8; (m - 1) * 1e30 == 0 where
    # kept, -1e30 where masked (finite => fully-masked rows stay NaN-free).
    mf = mask_ref[...].astype(jnp.float32)
    bias = (mf - 1.0) * jnp.float32(1e30)
    per_batch_mask = bias.ndim == 3

    bo = bo_ref[...]                          # (1, E) f32

    for b in range(Bb):                       # static unroll; block_b is small
        r0 = b * T
        # head-major (H, T, C) views of this batch element's projections
        qh = jnp.stack([q_proj[r0:r0 + T, h * C:(h + 1) * C] for h in range(H)], axis=0)
        kh = jnp.stack([k_proj[r0:r0 + T, h * C:(h + 1) * C] for h in range(H)], axis=0)
        vh = jnp.stack([v_proj[r0:r0 + T, h * C:(h + 1) * C] for h in range(H)], axis=0)

        # all-head scores in one batched MXU call (sqrt(C) already in wq)
        s = jnp.einsum('hqc,hkc->hqk', qh, kh,
                       preferred_element_type=jnp.float32)       # (H, T, T)
        s = s + (bias[b] if per_batch_mask else bias)

        # one numerically-stable softmax over all heads at once
        s = s - jnp.max(s, axis=-1, keepdims=True)
        p = jnp.exp(s)
        p = p * pl.reciprocal(jnp.sum(p, axis=-1, keepdims=True), approx=True)
        # TODO(synk): attention-weight dropout omitted (eval-mode identity).

        # batched context: (H, T, C)
        ctx = jnp.einsum('hqk,hkc->hqc', p.astype(cdt), vh,
                         preferred_element_type=jnp.float32)

        # output projection without a lane concat: accumulate per head
        acc = jnp.zeros((T, E), jnp.float32)
        for h in range(H):
            acc = acc + jnp.dot(ctx[h].astype(cdt), wo_ref[h],
                                preferred_element_type=jnp.float32)
        o_ref[b] = (acc + bo).astype(o_ref.dtype)


def _pick_block_b(batch, seq_len):
    """Batch elements per grid step: aim for ~128 MXU rows, keep >=2 steps."""
    if batch <= 1:
        return 1
    target = max(1, 128 // max(seq_len, 1))
    bb = 1
    for cand in range(min(batch, target), 0, -1):
        if batch % cand == 0:
            bb = cand
            break
    while bb > 1 and batch // bb < 2:         # leave work for both v7x TCs
        bb -= 1
        while bb > 1 and batch % bb != 0:
            bb -= 1
    return bb


def self_attention_forward(k, q, v, mask, wk, wq, wv, wo, bo, *,
                           num_heads, compute_dtype=jnp.bfloat16,
                           block_b=None):
    """Pallas implementation of SelfAttention.forward (eval mode)."""
    B, T, E = k.shape
    assert E % num_heads == 0
    C = E // num_heads

    if block_b is None:
        block_b = _pick_block_b(B, T)
    assert B % block_b == 0
    grid = (B // block_b,)

    # nn.Linear stores (out, in); present W.T so the kernel computes x @ W.
    # The module's sqrt(c) score scale is folded into the q projection weight.
    wq_t = (wq.T * math.sqrt(C)).astype(compute_dtype)
    wk_t = wk.T.astype(compute_dtype)
    wv_t = wv.T.astype(compute_dtype)
    # fc weight split per head so heads accumulate directly into (T, E).
    wo_h = wo.T.reshape(num_heads, C, E).astype(compute_dtype)
    bo2 = bo.reshape(1, E).astype(jnp.float32)

    # Normalise the mask to {0,1} int8: (T, T) when shared over batch
    # (constant index_map -> single DMA), (B, T, T) otherwise.
    m = jnp.asarray(mask)
    if m.ndim == 4:
        if m.shape[1] != 1:
            raise ValueError("per-head attention masks are not supported")
        m = m[:, 0]
    elif m.ndim == 2:
        m = m[None]
    if m.ndim != 3:
        raise ValueError(f"mask rank {m.ndim} not supported")
    m = (m != 0).astype(jnp.int8)
    if m.shape[0] == 1:
        mask_arr = jnp.broadcast_to(m[0], (T, T))
        mask_spec = pl.BlockSpec((T, T), lambda i: (0, 0))
    else:
        mask_arr = jnp.broadcast_to(m, (B, T, T))
        mask_spec = pl.BlockSpec((block_b, T, T), lambda i: (i, 0, 0))

    tok_spec = pl.BlockSpec((block_b, T, E), lambda i: (i, 0, 0))
    w_spec = pl.BlockSpec((E, E), lambda i: (0, 0))

    return pl.pallas_call(
        functools.partial(_self_attention_kernel, num_heads=num_heads),
        out_shape=jax.ShapeDtypeStruct((B, T, E), k.dtype),
        grid_spec=pltpu.PrefetchScalarGridSpec(
            num_scalar_prefetch=0,
            grid=grid,
            in_specs=[
                tok_spec, tok_spec, tok_spec,                          # q, k, v
                mask_spec,                                             # mask (int8)
                w_spec, w_spec, w_spec,                                # Wq^T*sqrt(C), Wk^T, Wv^T
                pl.BlockSpec((num_heads, C, E), lambda i: (0, 0, 0)),  # Wo per head
                pl.BlockSpec((1, E), lambda i: (0, 0)),                # fc bias
            ],
            out_specs=tok_spec,
        ),
        compiler_params=pltpu.CompilerParams(
            dimension_semantics=("parallel",)),      # batch blocks independent
    )(q, k, v, mask_arr, wq_t, wk_t, wv_t, wo_h, bo2)


def _reference(k, q, v, mask, wk, wq, wv, wo, bo, num_heads):
    """Plain-JAX port of the PyTorch forward (eval mode)."""
    B, T, E = k.shape
    C = E // num_heads
    K = (k @ wk.T).reshape(B, T, num_heads, C).transpose(0, 2, 1, 3)
    Q = (q @ wq.T).reshape(B, T, num_heads, C).transpose(0, 2, 1, 3)
    V = (v @ wv.T).reshape(B, T, num_heads, C).transpose(0, 2, 1, 3)
    attn = jnp.einsum("bhqc,bhkc->bhqk", Q, K) * math.sqrt(C)
    attn = jnp.where(mask == 0, -jnp.inf, attn)
    attn = jax.nn.softmax(attn, axis=-1)
    ctx = jnp.einsum("bhqk,bhkc->bhqc", attn, V)
    ctx = ctx.transpose(0, 2, 1, 3).reshape(B, T, E)
    return ctx @ wo.T + bo


if __name__ == "__main__":
    B, T, E, H = 2, 16, 128, 4

    key = jax.random.PRNGKey(0)
    kk, kq, kv, kwk, kwq, kwv, kwo, kbo = jax.random.split(key, 8)

    k = jax.random.normal(kk, (B, T, E), jnp.float32)
    q = jax.random.normal(kq, (B, T, E), jnp.float32)
    v = jax.random.normal(kv, (B, T, E), jnp.float32)

    bound = 1.0 / math.sqrt(E)   # nn.Linear default init range
    wk = jax.random.uniform(kwk, (E, E), jnp.float32, -bound, bound)
    wq = jax.random.uniform(kwq, (E, E), jnp.float32, -bound, bound)
    wv = jax.random.uniform(kwv, (E, E), jnp.float32, -bound, bound)
    wo = jax.random.uniform(kwo, (E, E), jnp.float32, -bound, bound)
    bo = jax.random.uniform(kbo, (E,), jnp.float32, -bound, bound)

    # Causal mask, broadcast over batch and heads.
    mask = jnp.tril(jnp.ones((T, T), jnp.float32))[None, None]   # (1, 1, T, T)

    y_ref = _reference(k, q, v, mask, wk, wq, wv, wo, bo, H)

    # float32 MXU path: tight structural check.
    y32 = jax.block_until_ready(self_attention_forward(
        k, q, v, mask, wk, wq, wv, wo, bo, num_heads=H,
        compute_dtype=jnp.float32))
    assert y32.shape == (B, T, E)
    err32 = jnp.max(jnp.abs(y32 - y_ref))
    assert jnp.allclose(y32, y_ref, atol=2e-3, rtol=2e-3), f"f32 max err {err32}"

    # default bf16 MXU path (f32 accumulation): looser tolerance.
    ybf = jax.block_until_ready(self_attention_forward(
        k, q, v, mask, wk, wq, wv, wo, bo, num_heads=H))
    errbf = jnp.max(jnp.abs(ybf - y_ref))
    assert jnp.allclose(ybf, y_ref, atol=5e-2, rtol=5e-2), f"bf16 max err {errbf}"

    print("KERNEL_OK")
</pallas_src>

<mosaic_0001>
module attributes {stable_mosaic.version = 11 : i64} {
  func.func @_self_attention_kernel(%arg0: i32, %arg1: memref<1x16x128xf32, #tpu.memory_space<vmem>>, %arg2: memref<1x16x128xf32, #tpu.memory_space<vmem>>, %arg3: memref<1x16x128xf32, #tpu.memory_space<vmem>>, %arg4: memref<16x16xi8, #tpu.memory_space<vmem>>, %arg5: memref<128x128xf32, #tpu.memory_space<vmem>>, %arg6: memref<128x128xf32, #tpu.memory_space<vmem>>, %arg7: memref<128x128xf32, #tpu.memory_space<vmem>>, %arg8: memref<4x32x128xf32, #tpu.memory_space<vmem>>, %arg9: memref<1x128xf32, #tpu.memory_space<vmem>>, %arg10: memref<1x16x128xf32, #tpu.memory_space<vmem>>) attributes {dimension_semantics = [#tpu.dimension_semantics<parallel>], iteration_bounds = array<i64: 2>, scalar_prefetch = 0 : i64, scratch_operands = 0 : i64, tpu.core_type = #tpu.core_type<tc>, window_params = [{transform_indices = @transform_0, window_bounds = array<i64: 1, 16, 128>}, {transform_indices = @transform_1, window_bounds = array<i64: 1, 16, 128>}, {transform_indices = @transform_2, window_bounds = array<i64: 1, 16, 128>}, {pipeline_mode = #tpu.pipeline_mode<synchronous>, transform_indices = @transform_3, window_bounds = array<i64: 16, 16>}, {pipeline_mode = #tpu.pipeline_mode<synchronous>, transform_indices = @transform_4, window_bounds = array<i64: 128, 128>}, {pipeline_mode = #tpu.pipeline_mode<synchronous>, transform_indices = @transform_5, window_bounds = array<i64: 128, 128>}, {pipeline_mode = #tpu.pipeline_mode<synchronous>, transform_indices = @transform_6, window_bounds = array<i64: 128, 128>}, {pipeline_mode = #tpu.pipeline_mode<synchronous>, transform_indices = @transform_7, window_bounds = array<i64: 4, 32, 128>}, {pipeline_mode = #tpu.pipeline_mode<synchronous>, transform_indices = @transform_8, window_bounds = array<i64: 1, 128>}, {transform_indices = @transform_9, window_bounds = array<i64: 1, 16, 128>}]} {
    %c0 = arith.constant 0 : index
    %c0_0 = arith.constant 0 : index
    %c0_1 = arith.constant 0 : index
    %0 = vector.load %arg1[%c0, %c0_0, %c0_1] : memref<1x16x128xf32, #tpu.memory_space<vmem>>, vector<1x16x128xf32>
    %1 = vector.shape_cast %0 : vector<1x16x128xf32> to vector<16x128xf32>
    %c0_2 = arith.constant 0 : index
    %c0_3 = arith.constant 0 : index
    %c0_4 = arith.constant 0 : index
    %2 = vector.load %arg2[%c0_2, %c0_3, %c0_4] : memref<1x16x128xf32, #tpu.memory_space<vmem>>, vector<1x16x128xf32>
    %3 = vector.shape_cast %2 : vector<1x16x128xf32> to vector<16x128xf32>
    %c0_5 = arith.constant 0 : index
    %c0_6 = arith.constant 0 : index
    %c0_7 = arith.constant 0 : index
    %4 = vector.load %arg3[%c0_5, %c0_6, %c0_7] : memref<1x16x128xf32, #tpu.memory_space<vmem>>, vector<1x16x128xf32>
    %5 = vector.shape_cast %4 : vector<1x16x128xf32> to vector<16x128xf32>
    %c0_8 = arith.constant 0 : index
    %c0_9 = arith.constant 0 : index
    %6 = vector.load %arg5[%c0_8, %c0_9] : memref<128x128xf32, #tpu.memory_space<vmem>>, vector<128x128xf32>
    %cst = arith.constant dense<0.000000e+00> : vector<16x128xf32>
    %7 = tpu.matmul %1, %6, %cst {dimension_numbers = #tpu.dot_dimension_numbers<[1], [0], [0], [1], [0, 0, 1, 1], [], []>} : vector<16x128xf32>, vector<128x128xf32>, vector<16x128xf32> -> vector<16x128xf32>
    %c0_10 = arith.constant 0 : index
    %c0_11 = arith.constant 0 : index
    %8 = vector.load %arg6[%c0_10, %c0_11] : memref<128x128xf32, #tpu.memory_space<vmem>>, vector<128x128xf32>
    %cst_12 = arith.constant dense<0.000000e+00> : vector<16x128xf32>
    %9 = tpu.matmul %3, %8, %cst_12 {dimension_numbers = #tpu.dot_dimension_numbers<[1], [0], [0], [1], [0, 0, 1, 1], [], []>} : vector<16x128xf32>, vector<128x128xf32>, vector<16x128xf32> -> vector<16x128xf32>
    %c0_13 = arith.constant 0 : index
    %c0_14 = arith.constant 0 : index
    %10 = vector.load %arg7[%c0_13, %c0_14] : memref<128x128xf32, #tpu.memory_space<vmem>>, vector<128x128xf32>
    %cst_15 = arith.constant dense<0.000000e+00> : vector<16x128xf32>
    %11 = tpu.matmul %5, %10, %cst_15 {dimension_numbers = #tpu.dot_dimension_numbers<[1], [0], [0], [1], [0, 0, 1, 1], [], []>} : vector<16x128xf32>, vector<128x128xf32>, vector<16x128xf32> -> vector<16x128xf32>
    %c0_16 = arith.constant 0 : index
    %c0_17 = arith.constant 0 : index
    %12 = vector.load %arg4[%c0_16, %c0_17] : memref<16x16xi8, #tpu.memory_space<vmem>>, vector<16x16xi8>
    %13 = arith.sitofp %12 : vector<16x16xi8> to vector<16x16xf32>
    %cst_18 = arith.constant 1.000000e+00 : f32
    %14 = vector.broadcast %cst_18 : f32 to vector<16x16xf32>
    %15 = arith.subf %13, %14 : vector<16x16xf32>
    %cst_19 = arith.constant 1.000000e+30 : f32
    %16 = vector.broadcast %cst_19 : f32 to vector<16x16xf32>
    %17 = arith.mulf %15, %16 : vector<16x16xf32>
    %c0_20 = arith.constant 0 : index
    %c0_21 = arith.constant 0 : index
    %18 = vector.load %arg9[%c0_20, %c0_21] : memref<1x128xf32, #tpu.memory_space<vmem>>, vector<1x128xf32>
    %19 = vector.extract_strided_slice %7 {offsets = [0, 0], sizes = [16, 32], strides = [1, 1]} : vector<16x128xf32> to vector<16x32xf32>
    %20 = vector.extract_strided_slice %7 {offsets = [0, 32], sizes = [16, 32], strides = [1, 1]} : vector<16x128xf32> to vector<16x32xf32>
    %21 = vector.extract_strided_slice %7 {offsets = [0, 64], sizes = [16, 32], strides = [1, 1]} : vector<16x128xf32> to vector<16x32xf32>
    %22 = vector.extract_strided_slice %7 {offsets = [0, 96], sizes = [16, 32], strides = [1, 1]} : vector<16x128xf32> to vector<16x32xf32>
    %23 = vector.shape_cast %19 : vector<16x32xf32> to vector<1x16x32xf32>
    %24 = vector.shape_cast %20 : vector<16x32xf32> to vector<1x16x32xf32>
    %25 = vector.shape_cast %21 : vector<16x32xf32> to vector<1x16x32xf32>
    %26 = vector.shape_cast %22 : vector<16x32xf32> to vector<1x16x32xf32>
    %27 = tpu.concatenate %23, %24, %25, %26 in 0 : vector<1x16x32xf32>, vector<1x16x32xf32>, vector<1x16x32xf32>, vector<1x16x32xf32> -> vector<4x16x32xf32>
    %28 = vector.extract_strided_slice %9 {offsets = [0, 0], sizes = [16, 32], strides = [1, 1]} : vector<16x128xf32> to vector<16x32xf32>
    %29 = vector.extract_strided_slice %9 {offsets = [0, 32], sizes = [16, 32], strides = [1, 1]} : vector<16x128xf32> to vector<16x32xf32>
    %30 = vector.extract_strided_slice %9 {offsets = [0, 64], sizes = [16, 32], strides = [1, 1]} : vector<16x128xf32> to vector<16x32xf32>
    %31 = vector.extract_strided_slice %9 {offsets = [0, 96], sizes = [16, 32], strides = [1, 1]} : vector<16x128xf32> to vector<16x32xf32>
    %32 = vector.shape_cast %28 : vector<16x32xf32> to vector<1x16x32xf32>
    %33 = vector.shape_cast %29 : vector<16x32xf32> to vector<1x16x32xf32>
    %34 = vector.shape_cast %30 : vector<16x32xf32> to vector<1x16x32xf32>
    %35 = vector.shape_cast %31 : vector<16x32xf32> to vector<1x16x32xf32>
    %36 = tpu.concatenate %32, %33, %34, %35 in 0 : vector<1x16x32xf32>, vector<1x16x32xf32>, vector<1x16x32xf32>, vector<1x16x32xf32> -> vector<4x16x32xf32>
    %37 = vector.extract_strided_slice %11 {offsets = [0, 0], sizes = [16, 32], strides = [1, 1]} : vector<16x128xf32> to vector<16x32xf32>
    %38 = vector.extract_strided_slice %11 {offsets = [0, 32], sizes = [16, 32], strides = [1, 1]} : vector<16x128xf32> to vector<16x32xf32>
    %39 = vector.extract_strided_slice %11 {offsets = [0, 64], sizes = [16, 32], strides = [1, 1]} : vector<16x128xf32> to vector<16x32xf32>
    %40 = vector.extract_strided_slice %11 {offsets = [0, 96], sizes = [16, 32], strides = [1, 1]} : vector<16x128xf32> to vector<16x32xf32>
    %41 = vector.shape_cast %37 : vector<16x32xf32> to vector<1x16x32xf32>
    %42 = vector.shape_cast %38 : vector<16x32xf32> to vector<1x16x32xf32>
    %43 = vector.shape_cast %39 : vector<16x32xf32> to vector<1x16x32xf32>
    %44 = vector.shape_cast %40 : vector<16x32xf32> to vector<1x16x32xf32>
    %45 = tpu.concatenate %41, %42, %43, %44 in 0 : vector<1x16x32xf32>, vector<1x16x32xf32>, vector<1x16x32xf32>, vector<1x16x32xf32> -> vector<4x16x32xf32>
    "tpu.trace_start"() <{level = 10 : i32, message = "hqc,hkc->hqk"}> : () -> ()
    %cst_22 = arith.constant dense<0.000000e+00> : vector<4x16x16xf32>
    %46 = tpu.matmul %27, %36, %cst_22 {dimension_numbers = #tpu.dot_dimension_numbers<[2], [2], [1], [1], [0, 0, 0, 1, 1, 1], [0], [0]>} : vector<4x16x32xf32>, vector<4x16x32xf32>, vector<4x16x16xf32> -> vector<4x16x16xf32>
    "tpu.trace_stop"() : () -> ()
    %47 = vector.shape_cast %17 : vector<16x16xf32> to vector<1x16x16xf32>
    %48 = vector.broadcast %47 : vector<1x16x16xf32> to vector<4x16x16xf32>
    %49 = arith.addf %46, %48 : vector<4x16x16xf32>
    %cst_23 = arith.constant dense<0xFF800000> : vector<4x16xf32>
    %50 = vector.multi_reduction <maximumf>, %49, %cst_23 [2] : vector<4x16x16xf32> to vector<4x16xf32>
    %51 = vector.shape_cast %50 : vector<4x16xf32> to vector<4x16x1xf32>
    %52 = vector.broadcast %51 : vector<4x16x1xf32> to vector<4x16x16xf32>
    %53 = arith.subf %49, %52 : vector<4x16x16xf32>
    %54 = math.exp %53 : vector<4x16x16xf32>
    %cst_24 = arith.constant dense<0.000000e+00> : vector<4x16xf32>
    %55 = vector.multi_reduction <add>, %54, %cst_24 [2] : vector<4x16x16xf32> to vector<4x16xf32>
    %56 = vector.shape_cast %55 : vector<4x16xf32> to vector<4x16x1xf32>
    %57 = tpu.reciprocal %56 {approx = true} : vector<4x16x1xf32> -> vector<4x16x1xf32>
    %58 = vector.broadcast %57 : vector<4x16x1xf32> to vector<4x16x16xf32>
    %59 = arith.mulf %54, %58 : vector<4x16x16xf32>
    "tpu.trace_start"() <{level = 10 : i32, message = "hqk,hkc->hqc"}> : () -> ()
    %cst_25 = arith.constant dense<0.000000e+00> : vector<4x16x32xf32>
    %60 = tpu.matmul %59, %45, %cst_25 {dimension_numbers = #tpu.dot_dimension_numbers<[2], [1], [1], [2], [0, 0, 0, 1, 1, 2], [0], [0]>} : vector<4x16x16xf32>, vector<4x16x32xf32>, vector<4x16x32xf32> -> vector<4x16x32xf32>
    %cst_26 = arith.constant 0.000000e+00 : f32
    "tpu.trace_stop"() : () -> ()
    %61 = vector.broadcast %cst_26 : f32 to vector<16x128xf32>
    %62 = vector.extract_strided_slice %60 {offsets = [0, 0, 0], sizes = [1, 16, 32], strides = [1, 1, 1]} : vector<4x16x32xf32> to vector<1x16x32xf32>
    %63 = vector.shape_cast %62 : vector<1x16x32xf32> to vector<16x32xf32>
    %c0_27 = arith.constant 0 : index
    %c0_28 = arith.constant 0 : index
    %c0_29 = arith.constant 0 : index
    %64 = vector.load %arg8[%c0_27, %c0_28, %c0_29] : memref<4x32x128xf32, #tpu.memory_space<vmem>>, vector<1x32x128xf32>
    %65 = vector.shape_cast %64 : vector<1x32x128xf32> to vector<32x128xf32>
    %cst_30 = arith.constant dense<0.000000e+00> : vector<16x128xf32>
    %66 = tpu.matmul %63, %65, %cst_30 {dimension_numbers = #tpu.dot_dimension_numbers<[1], [0], [0], [1], [0, 0, 1, 1], [], []>} : vector<16x32xf32>, vector<32x128xf32>, vector<16x128xf32> -> vector<16x128xf32>
    %67 = arith.addf %61, %66 : vector<16x128xf32>
    %68 = vector.extract_strided_slice %60 {offsets = [1, 0, 0], sizes = [1, 16, 32], strides = [1, 1, 1]} : vector<4x16x32xf32> to vector<1x16x32xf32>
    %69 = vector.shape_cast %68 : vector<1x16x32xf32> to vector<16x32xf32>
    %c1 = arith.constant 1 : index
    %c0_31 = arith.constant 0 : index
    %c0_32 = arith.constant 0 : index
    %70 = vector.load %arg8[%c1, %c0_31, %c0_32] : memref<4x32x128xf32, #tpu.memory_space<vmem>>, vector<1x32x128xf32>
    %71 = vector.shape_cast %70 : vector<1x32x128xf32> to vector<32x128xf32>
    %cst_33 = arith.constant dense<0.000000e+00> : vector<16x128xf32>
    %72 = tpu.matmul %69, %71, %cst_33 {dimension_numbers = #tpu.dot_dimension_numbers<[1], [0], [0], [1], [0, 0, 1, 1], [], []>} : vector<16x32xf32>, vector<32x128xf32>, vector<16x128xf32> -> vector<16x128xf32>
    %73 = arith.addf %67, %72 : vector<16x128xf32>
    %74 = vector.extract_strided_slice %60 {offsets = [2, 0, 0], sizes = [1, 16, 32], strides = [1, 1, 1]} : vector<4x16x32xf32> to vector<1x16x32xf32>
    %75 = vector.shape_cast %74 : vector<1x16x32xf32> to vector<16x32xf32>
    %c2 = arith.constant 2 : index
    %c0_34 = arith.constant 0 : index
    %c0_35 = arith.constant 0 : index
    %76 = vector.load %arg8[%c2, %c0_34, %c0_35] : memref<4x32x128xf32, #tpu.memory_space<vmem>>, vector<1x32x128xf32>
    %77 = vector.shape_cast %76 : vector<1x32x128xf32> to vector<32x128xf32>
    %cst_36 = arith.constant dense<0.000000e+00> : vector<16x128xf32>
    %78 = tpu.matmul %75, %77, %cst_36 {dimension_numbers = #tpu.dot_dimension_numbers<[1], [0], [0], [1], [0, 0, 1, 1], [], []>} : vector<16x32xf32>, vector<32x128xf32>, vector<16x128xf32> -> vector<16x128xf32>
    %79 = arith.addf %73, %78 : vector<16x128xf32>
    %80 = vector.extract_strided_slice %60 {offsets = [3, 0, 0], sizes = [1, 16, 32], strides = [1, 1, 1]} : vector<4x16x32xf32> to vector<1x16x32xf32>
    %81 = vector.shape_cast %80 : vector<1x16x32xf32> to vector<16x32xf32>
    %c3 = arith.constant 3 : index
    %c0_37 = arith.constant 0 : index
    %c0_38 = arith.constant 0 : index
    %82 = vector.load %arg8[%c3, %c0_37, %c0_38] : memref<4x32x128xf32, #tpu.memory_space<vmem>>, vector<1x32x128xf32>
    %83 = vector.shape_cast %82 : vector<1x32x128xf32> to vector<32x128xf32>
    %cst_39 = arith.constant dense<0.000000e+00> : vector<16x128xf32>
    %84 = tpu.matmul %81, %83, %cst_39 {dimension_numbers = #tpu.dot_dimension_numbers<[1], [0], [0], [1], [0, 0, 1, 1], [], []>} : vector<16x32xf32>, vector<32x128xf32>, vector<16x128xf32> -> vector<16x128xf32>
    %85 = arith.addf %79, %84 : vector<16x128xf32>
    %86 = vector.broadcast %18 : vector<1x128xf32> to vector<16x128xf32>
    %87 = arith.addf %85, %86 : vector<16x128xf32>
    %c0_40 = arith.constant 0 : index
    %c0_41 = arith.constant 0 : index
    %c0_42 = arith.constant 0 : index
    %88 = vector.load %arg10[%c0_40, %c0_41, %c0_42] : memref<1x16x128xf32, #tpu.memory_space<vmem>>, vector<1x16x128xf32>
    %89 = vector.shape_cast %88 : vector<1x16x128xf32> to vector<16x128xf32>
    %90 = vector.shape_cast %87 : vector<16x128xf32> to vector<1x16x128xf32>
    tpu.vector_store %arg10[%c0_40, %c0_41, %c0_42], %90 {strides = array<i32>} : memref<1x16x128xf32, #tpu.memory_space<vmem>>, vector<1x16x128xf32>,
    return
  }
  func.func @transform_0(%arg0: i32) -> (i32, i32, i32) {
    %c0_i32 = arith.constant 0 : i32
    %c0_i32_0 = arith.constant 0 : i32
    %c0_i32_1 = arith.constant 0 : i32
    return %arg0, %c0_i32, %c0_i32_0 : i32, i32, i32
  }
  func.func @transform_1(%arg0: i32) -> (i32, i32, i32) {
    %c0_i32 = arith.constant 0 : i32
    %c0_i32_0 = arith.constant 0 : i32
    %c0_i32_1 = arith.constant 0 : i32
    return %arg0, %c0_i32, %c0_i32_0 : i32, i32, i32
  }
  func.func @transform_2(%arg0: i32) -> (i32, i32, i32) {
    %c0_i32 = arith.constant 0 : i32
    %c0_i32_0 = arith.constant 0 : i32
    %c0_i32_1 = arith.constant 0 : i32
    return %arg0, %c0_i32, %c0_i32_0 : i32, i32, i32
  }
  func.func @transform_3(%arg0: i32) -> (i32, i32) {
    %c0_i32 = arith.constant 0 : i32
    %c0_i32_0 = arith.constant 0 : i32
    %c0_i32_1 = arith.constant 0 : i32
    return %c0_i32, %c0_i32_0 : i32, i32
  }
  func.func @transform_4(%arg0: i32) -> (i32, i32) {
    %c0_i32 = arith.constant 0 : i32
    %c0_i32_0 = arith.constant 0 : i32
    %c0_i32_1 = arith.constant 0 : i32
    return %c0_i32, %c0_i32_0 : i32, i32
  }
  func.func @transform_5(%arg0: i32) -> (i32, i32) {
    %c0_i32 = arith.constant 0 : i32
    %c0_i32_0 = arith.constant 0 : i32
    %c0_i32_1 = arith.constant 0 : i32
    return %c0_i32, %c0_i32_0 : i32, i32
  }
  func.func @transform_6(%arg0: i32) -> (i32, i32) {
    %c0_i32 = arith.constant 0 : i32
    %c0_i32_0 = arith.constant 0 : i32
    %c0_i32_1 = arith.constant 0 : i32
    return %c0_i32, %c0_i32_0 : i32, i32
  }
  func.func @transform_7(%arg0: i32) -> (i32, i32, i32) {
    %c0_i32 = arith.constant 0 : i32
    %c0_i32_0 = arith.constant 0 : i32
    %c0_i32_1 = arith.constant 0 : i32
    %c0_i32_2 = arith.constant 0 : i32
    return %c0_i32, %c0_i32_0, %c0_i32_1 : i32, i32, i32
  }
  func.func @transform_8(%arg0: i32) -> (i32, i32) {
    %c0_i32 = arith.constant 0 : i32
    %c0_i32_0 = arith.constant 0 : i32
    %c0_i32_1 = arith.constant 0 : i32
    return %c0_i32, %c0_i32_0 : i32, i32
  }
  func.func @transform_9(%arg0: i32) -> (i32, i32, i32) {
    %c0_i32 = arith.constant 0 : i32
    %c0_i32_0 = arith.constant 0 : i32
    %c0_i32_1 = arith.constant 0 : i32
    return %arg0, %c0_i32, %c0_i32_0 : i32, i32, i32
  }
}

</mosaic_0001>

<bundles_post_ra>
// kernel: tpu_custom_call.1
= control target key start
LH: loop header
LB: loop body
LE: loop exit
PB: predicated region body
PF: predicated region fallthrough
CT: control target
= control target key end

     0   :  { %s3664_s0 = inlined_call_operand.hbm [shape: f32[2,16,128], index: 0, kind: input, shape index: {}]   ;;  %s3665_s1 = inlined_call_operand.hbm [shape: f32[2,16,128], index: 1, kind: input, shape index: {}]   ;;  %s3666_s2 = inlined_call_operand.hbm [shape: f32[2,16,128], index: 2, kind: input, shape index: {}]   ;;  %s3667_s3 = inlined_call_operand.vmem [shape: s8[16,16], index: 3, kind: input, shape index: {}]   ;;  %s3668_s4 = inlined_call_operand.hbm [shape: f32[128,128], index: 4, kind: input, shape index: {}]   ;;  %s3669_s5 = inlined_call_operand.hbm [shape: f32[128,128], index: 5, kind: input, shape index: {}]   ;;  %s3670_s6 = inlined_call_operand.hbm [shape: f32[128,128], index: 6, kind: input, shape index: {}]   ;;  %s3671_s7 = inlined_call_operand.hbm [shape: f32[4,32,128], index: 7, kind: input, shape index: {}]   ;;  %s3672_s8 = inlined_call_operand.vmem [shape: f32[1,128], index: 8, kind: input, shape index: {}]   ;;  %s3673_s9 = inlined_call_operand.hbm [shape: f32[2,16,128], index: 9, kind: output, shape index: {}]  }
   0x1   :  { %3699 = sst [smem:[#allocation26_spill]] %s3665_s1 }
   0x2   :  { %3700 = sst [smem:[#allocation27_spill]] %s3668_s4 }
   0x3   :  { %3701 = sst [smem:[#allocation28_spill]] %s3670_s6 }
   0x4   :  { %3702 = sst [smem:[#allocation29_spill]] %s3672_s8 }
   0x5   :  { %3703 = sst [smem:[#allocation30_spill]] %s3673_s9 }
   0x6   :  { %14 = vsyncpa [#allocation3], 0 }
   0x7   :  { %16 = vsyncpa [#allocation3 + $0x1], 0 }
   0x8   :  { %17 = vsyncpa [#allocation6], 0 }
   0x9   :  { %19 = vsyncpa [#allocation6 + $0x1], 0 }
   0xa   :  { %20 = vsyncpa [#allocation9], 0 }
   0xb   :  { %21 = vsyncpa [#allocation12], 0 }
   0xc   :  { %22 = vsyncpa [#allocation4], 0 }
   0xd   :  { %24 = vsyncpa [#allocation4 + $0x1], 0  ;;  %s3170_s30 = smov 0   ;;  %s3172_s10 = smov 0  }
   0xe   :  { %s3174_s11 = smov 0   ;;  %s3176_s12 = smov 0  }
   0xf LB: > { %3704 = sst [smem:[#allocation20_spill]] %s3091_s30  ;;  %s3191_s13 = sadd.s32 4294967295, %s3103_s12   ;;  %s3103_s12 = sphi %s3176_s12, %s3746_s12   ;;  %s3099_s11 = sphi %s3174_s11, %s3750_s11   ;;  %s3095_s10 = sphi %s3172_s10, %s3749_s10   ;;  %s3091_s30 = sphi %s3170_s30, %s3748_s30  }
  0x10   : > { %3705 = sst [smem:[#allocation21_spill]] %s3103_s12  ;;  %s2095_s14 = sadd.s32 4294967294, %s3103_s12  }
  0x11   : > { %p50_p0 = scmp.ne.s32.totalorder %s3095_s10, %s3091_s30  ;;  %p3674_p1 = scmp.eq.s32.totalorder %s3191_s13, 0 }
  0x12   : > { %p258_p3 = scmp.eq.s32.totalorder %s2095_s14, 1  ;;  %p2096_p5 = scmp.ge.s32.totalorder %s3103_s12, 1 }
  0x13   : > { %p3200_p4 = por %p3674_p1, %p50_p0  ;;  %p265_p7 = scmp.lt.s32.totalorder %s3103_s12, 3 }
  0x14   : > { %p3205_p6 = por %p258_p3, %p50_p0  ;;  %s3105_s18 = smov [#allocation8]  }
  0x15   : > { %s3706_s15 = scalar_select %p3200_p4, 1, 0 }
  0x16   : > { %s3707_s16 = scalar_select %p3205_p6, 1, 0 }
  0x17   : > { %p3210_p8 = pnand %p2096_p5, %p265_p7  ;;  %s280_s19 = sshll.u32 %s3105_s18, 4  ;;  %s3214_s19 = int_to_ptr.vmem [resolvable:$true] %s280_s19 }
  0x18   : > { %3708 = sst [smem:[#allocation22_spill]] %s3707_s16  ;;  %s3106_s21 = smov [#allocation11]  }
  0x19   : > { %s3709_s17 = scalar_select %p3210_p8, 1, 0 }
  0x1a   : > { %p2681_p9 = pneg %p3210_p8  ;;  %s306_s22 = sshll.u32 %s3106_s21, 4  ;;  %s3225_s22 = int_to_ptr.vmem [resolvable:$true] %s306_s22 }
  0x1b   : > { %s3711_s4 = sld [smem:[#allocation27_spill]] }
  0x1c   : > { %p3221_p11 = pnand %p2681_p9, %p3674_p1 }
  0x1e   : > { %s3710_s20 = scalar_select %p3221_p11, 1, 0 }
  0x1f   : > { %p3235_p13 = pneg %p3221_p11 }
  0x21   : > { %s2823_s25 = scalar_lea.hbm %s3711_s4, 2048 }
  0x22   : > { %p2824_p12 = scmp.ne.s32.totalorder %s3711_s4, %s2823_s25  ;;  %p2830_p5 = scmp.lt.u32.totalorder %s2823_s25, %s3711_s4 }
  0x23   : > { %s3712_s28 = scalar_select %p3235_p13, 1, 0 }
  0x24   : > { %p2826_p0 = pnand %p3235_p13, %p2824_p12 }
  0x26   : > { %p2827_p3 = pneg %p2826_p0 }
  0x28   : > { %p2832_p7 = pnand %p2830_p5, %p2827_p3 }
  0x2a   : > { %2835 = shalt.err (!%p2832_p7)
}
  0x2b   : > { %s2836_s18 = scalar_lea.vmem %s3214_s19, 2048  ;;  %p2844_p2 = scmp.lt.s32.totalorder %s3214_s19, %s3214_s19 }
  0x2c   : > { %p2837_p9 = scmp.ne.s32.totalorder %s3214_s19, %s2836_s18  ;;  %p2845_p6 = scmp.lt.s32.totalorder %s2836_s18, %s2836_s18 }
  0x2e   : > { %p2839_p10 = pnand %p2837_p9, %p3235_p13  ;;  %p2846_p12 = por %p2845_p6, %p2844_p2 }
  0x30   : > { %p2840_p1 = pneg %p2839_p10 }
  0x32   : > { %p2847_p0 = pnand %p2846_p12, %p2840_p1 }
  0x34   : > { %2850 = shalt.err (!%p2847_p0)
}
  0x35   : > { %s3678_s21 = smov 128   ;;  %s3680_s23 = smov 8  }
  0x36   : > { %2684 = dma.hbm_to_vmem [thread:$0]  (!%p3221_p11), %s3711_s4, 2048, %s3214_s19, [#allocation9], %s3678_s21, %s3678_s21, %s3680_s23  }
  0x37   : > { %s3713_s6 = sld [smem:[#allocation28_spill]] }
  0x3d   : > { %s2851_s29 = scalar_lea.hbm %s3713_s6, 2048 }
  0x3e   : > { %p2852_p1 = scmp.ne.s32.totalorder %s3713_s6, %s2851_s29  ;;  %p2858_p10 = scmp.lt.u32.totalorder %s2851_s29, %s3713_s6 }
  0x40   : > { %p2854_p2 = pnand %p2852_p1, %p3235_p13 }
  0x42   : > { %p2855_p6 = pneg %p2854_p2 }
  0x44   : > { %p2860_p3 = pnand %p2858_p10, %p2855_p6 }
  0x46   : > { %2863 = shalt.err (!%p2860_p3)
}
  0x47   : > { %s2864_s19 = scalar_lea.vmem %s3225_s22, 2048  ;;  %p2872_p12 = scmp.lt.s32.totalorder %s3225_s22, %s3225_s22 }
  0x48   : > { %p2865_p5 = scmp.ne.s32.totalorder %s3225_s22, %s2864_s19  ;;  %p2873_p0 = scmp.lt.s32.totalorder %s2864_s19, %s2864_s19 }
  0x4a   : > { %p2867_p7 = pnand %p2865_p5, %p3235_p13  ;;  %p2874_p1 = por %p2873_p0, %p2872_p12 }
  0x4c   : > { %p2868_p9 = pneg %p2867_p7 }
  0x4e   : > { %p2875_p2 = pnand %p2874_p1, %p2868_p9 }
  0x50   : > { %2878 = shalt.err (!%p2875_p2)
}
  0x51   : > { %2690 = dma.hbm_to_vmem [thread:$0]  (!%p3221_p11), %s3713_s6, 2048, %s3225_s22, [#allocation12], %s3678_s21, %s3678_s21, %s3680_s23  }
  0x52   : > { %s3286_s24 = sadd.s32 1, %s3103_s12   ;;  %s37_s25 = sadd.s32 1, %s3099_s11 }
  0x53   : > { %3714 = sst [smem:[#allocation23_spill]] %s3286_s24  ;;  %s34_s26 = ssub.s32 %s3103_s12, %s3286_s24 }
  0x54   : > { %p44_p6 = scmp.ne.s32.totalorder %s3099_s11, %s3095_s10  ;;  %p35_p10 = scmp.eq.s32.totalorder %s34_s26, 0 }
  0x55   : > { %p45_p3 = scmp.eq.s32.totalorder %s3103_s12, 0  ;;  %p3715_p5 = scmp.eq.s32.totalorder %s3191_s13, 1 }
  0x56   : > { %p2712_p9 = scmp.lt.s32.totalorder %s3103_s12, 2  ;;  %s3677_s14 = sand.u32 1, %s3099_s11  }
  0x57   : > { %p3296_p7 = por %p3715_p5, %p44_p6  ;;  %p46_p12 = por %p45_p3, %p44_p6 }
  0x58   : > { %s3302_s29 = scalar_select %p35_p10, %s3099_s11, %s37_s25  }
  0x59   : > { %s3716_s27 = scalar_select %p3296_p7, 1, 0 }
  0x5a   : > { %3718 = sst [smem:[#allocation25_spill]] %s3302_s29  ;;  %s3307_s22 = sshll.u32 %s3677_s14, 4 }
  0x5b   : > { %3717 = sst [smem:[#allocation24_spill]] %s3716_s27  ;;  %s3310_s18 = sshll.u32 %s3103_s12, 8 }
  0x5c   : > { %p3312_p0 = pnand %p2712_p9, %p46_p12  ;;  %s357_s30 = sand.u32 1, %s3103_s12  }
  0x5d   : > { %s3720_s1 = sld [smem:[#allocation26_spill]]  ;;  %s361_s14 = scalar_lea.vmem [#allocation5], %s3307_s22 }
  0x5e   : > { %s3719_s19 = scalar_select %p3312_p0, 1, 0 }
  0x5f   : > { %s368_s21 = sshll.u32 %s361_s14, 4  ;;  %s3109_s23 = smov [#allocation10]   ;;  %s3324_s21 = int_to_ptr.vmem [resolvable:$true] %s368_s21 }
  0x60   : > { %s3326_s4 = sshll.u32 %s3109_s23, 4  ;;  %s3328_s6 = scalar_lea.sflag [#allocation6], %s357_s30  ;;  %s294_s4 = int_to_ptr.vmem [resolvable:$true] %s3326_s4 }
  0x61   : > { %p3334_p2 = pneg %p3312_p0 }
  0x63   : > { %s3321_s25 = scalar_lea.hbm %s3720_s1, %s3310_s18  ;;  %s2884_s24 = scalar_lea.hbm %s3720_s1, 512 }
  0x64   : > { %s2879_s29 = scalar_lea.hbm %s3321_s25, 256  ;;  %p2885_p3 = scmp.lt.u32.totalorder %s3321_s25, %s3720_s1 }
  0x65   : > { %p2880_p1 = scmp.ne.s32.totalorder %s3321_s25, %s2879_s29  ;;  %p2886_p5 = scmp.lt.u32.totalorder %s2884_s24, %s2879_s29 }
  0x66   : > { %s3721_s16 = scalar_select %p3334_p2, 1, 0 }
  0x67   : > { %p2882_p6 = pnand %p3334_p2, %p2880_p1  ;;  %p2887_p9 = por %p2886_p5, %p2885_p3 }
  0x68   : > { %p2888_p12 = scmp.lt.u32.totalorder %s2879_s29, %s3321_s25 }
  0x69   : > { %p2883_p10 = pneg %p2882_p6 }
  0x6a   : > { %p2889_p7 = por %p2888_p12, %p2887_p9 }
  0x6c   : > { %p2890_p4 = pnand %p2889_p7, %p2883_p10 }
  0x6e   : > { %2893 = shalt.err (!%p2890_p4)
}
  0x6f   : > { %s2894_s30 = scalar_lea.vmem %s3324_s21, 256  ;;  %s3110_s26 = smov [#allocation5]  }
  0x70   : > { %p2895_p1 = scmp.ne.s32.totalorder %s3324_s21, %s2894_s30  ;;  %s2899_s14 = sshll.u32 %s3110_s26, 4  ;;  %s2900_s14 = int_to_ptr.vmem [resolvable:$false] %s2899_s14 }
  0x71   : > { %s2901_s12 = scalar_lea.vmem %s2900_s14, 512  ;;  %p2902_p11 = scmp.lt.s32.totalorder %s3324_s21, %s2900_s14 }
  0x72   : > { %p2897_p6 = pnand %p2895_p1, %p3334_p2  ;;  %p2903_p13 = scmp.lt.s32.totalorder %s2901_s12, %s2894_s30 }
  0x74   : > { %p2898_p8 = pneg %p2897_p6  ;;  %p2904_p3 = por %p2903_p13, %p2902_p11 }
  0x76   : > { %p2905_p5 = pnand %p2904_p3, %p2898_p8 }
  0x78   : > { %2908 = shalt.err (!%p2905_p5)
}
  0x79   : > { %s3722_s24 = smov 8   ;;  %s3723_s29 = smov 128  }
  0x7a   : > { %2700 = dma.hbm_to_vmem [thread:$0]  (!%p3312_p0), %s3321_s25, 256, %s3324_s21, %s3328_s6, %s3723_s29, %s3723_s29, %s3722_s24  }
  0x7b   : > { %s2909_s14 = scalar_lea.hbm %s3669_s5, 2048  ;;  %p3724_p8 = scmp.ne.s32.totalorder %s3712_s28, 0 }
  0x7c   : > { %p2910_p4 = scmp.ne.s32.totalorder %s3669_s5, %s2909_s14  ;;  %p2916_p7 = scmp.lt.u32.totalorder %s2909_s14, %s3669_s5 }
  0x7e   : > { %p2912_p11 = pnand %p2910_p4, %p3724_p8 }
  0x80   : > { %p2913_p13 = pneg %p2912_p11 }
  0x82   : > { %p2918_p10 = pnand %p2916_p7, %p2913_p13 }
  0x84   : > { %2921 = shalt.err (!%p2918_p10)
}
  0x85   : > { %s2922_s27 = scalar_lea.vmem %s294_s4, 2048  ;;  %p2930_p6 = scmp.lt.s32.totalorder %s294_s4, %s294_s4 }
  0x86   : > { %p2923_p9 = scmp.ne.s32.totalorder %s294_s4, %s2922_s27  ;;  %p2931_p3 = scmp.lt.s32.totalorder %s2922_s27, %s2922_s27 }
  0x88   : > { %p2925_p12 = pnand %p2923_p9, %p3724_p8  ;;  %p2932_p5 = por %p2931_p3, %p2930_p6 }
  0x8a   : > { %p2926_p1 = pneg %p2925_p12 }
  0x8c   : > { %p2933_p0 = pnand %p2932_p5, %p2926_p1 }
  0x8e   : > { %2936 = shalt.err (!%p2933_p0)
}
  0x8f   : > { %p3725_p4 = scmp.ne.s32.totalorder %s3710_s20, 0  ;;  %s3111_s21 = smov [#allocation13]  }
  0x90   : > { %s319_s25 = sshll.u32 %s3111_s21, 4  ;;  %s2937_s27 = scalar_lea.hbm %s3671_s7, 2048  ;;  %s320_s25 = int_to_ptr.vmem [resolvable:$true] %s319_s25 }
  0x91   : > { %2687 = dma.hbm_to_vmem [thread:$0]  (!%p3725_p4), %s3669_s5, 2048, %s294_s4, [#allocation9], %s3723_s29, %s3723_s29, %s3722_s24  }
  0x92   : > { %p2938_p0 = scmp.ne.s32.totalorder %s3671_s7, %s2937_s27  ;;  %p2944_p7 = scmp.lt.u32.totalorder %s2937_s27, %s3671_s7 }
  0x94   : > { %p2940_p11 = pnand %p2938_p0, %p3724_p8 }
  0x96   : > { %p2941_p13 = pneg %p2940_p11 }
  0x98   : > { %p2946_p10 = pnand %p2944_p7, %p2941_p13 }
  0x9a   : > { %2949 = shalt.err (!%p2946_p10)
}
  0x9b   : > { %s2950_s4 = scalar_lea.vmem %s320_s25, 2048  ;;  %p2958_p6 = scmp.lt.s32.totalorder %s320_s25, %s320_s25 }
  0x9c   : > { %p2951_p9 = scmp.ne.s32.totalorder %s320_s25, %s2950_s4  ;;  %p2959_p3 = scmp.lt.s32.totalorder %s2950_s4, %s2950_s4 }
  0x9e   : > { %p2953_p12 = pnand %p2951_p9, %p3724_p8  ;;  %p2960_p5 = por %p2959_p3, %p2958_p6 }
  0xa0   : > { %p2954_p1 = pneg %p2953_p12 }
  0xa2   : > { %p2961_p2 = pnand %p2960_p5, %p2954_p1 }
  0xa4   : > { %2964 = shalt.err (!%p2961_p2)
}
  0xa5   : > { %2693 = dma.hbm_to_vmem [thread:$0]  (!%p3725_p4), %s3671_s7, 2048, %s320_s25, [#allocation12], %s3723_s29, %s3723_s29, %s3722_s24  }
  0xa6   : > { %s3408_s21 = scalar_lea.hbm %s3664_s0, %s3310_s18  ;;  %s340_s20 = scalar_lea.vmem [#allocation2], %s3307_s22 }
  0xa7   : > { %s347_s23 = sshll.u32 %s340_s20, 4  ;;  %s3726_s26 = sand.u32 1, %s3099_s11   ;;  %s3411_s23 = int_to_ptr.vmem [resolvable:$true] %s347_s23 }
  0xa8   : > { %s3415_s27 = scalar_lea.sflag [#allocation3], %s3726_s26  ;;  %s2965_s14 = scalar_lea.hbm %s3408_s21, 256 }
  0xa9   : > { %p2966_p2 = scmp.ne.s32.totalorder %s3408_s21, %s2965_s14  ;;  %p3727_p8 = scmp.ne.s32.totalorder %s3721_s16, 0 }
  0xaa   : > { %s2970_s12 = scalar_lea.hbm %s3664_s0, 512  ;;  %p2971_p11 = scmp.lt.u32.totalorder %s3408_s21, %s3664_s0 }
  0xab   : > { %p2968_p4 = pnand %p2966_p2, %p3727_p8  ;;  %p2972_p13 = scmp.lt.u32.totalorder %s2970_s12, %s2965_s14 }
  0xac   : > { %p2974_p10 = scmp.lt.u32.totalorder %s2965_s14, %s3408_s21 }
  0xad   : > { %p2969_p0 = pneg %p2968_p4  ;;  %p2973_p7 = por %p2972_p13, %p2971_p11 }
  0xaf   : > { %p2975_p9 = por %p2974_p10, %p2973_p7 }
  0xb1   : > { %p2976_p12 = pnand %p2975_p9, %p2969_p0 }
  0xb3   : > { %2979 = shalt.err (!%p2976_p12)
}
  0xb4   : > { %s2980_s1 = scalar_lea.vmem %s3411_s23, 256  ;;  %s3112_s28 = smov [#allocation2]  }
  0xb5   : > { %p2981_p1 = scmp.ne.s32.totalorder %s3411_s23, %s2980_s1  ;;  %s2985_s9 = sshll.u32 %s3112_s28, 4  ;;  %s2986_s9 = int_to_ptr.vmem [resolvable:$false] %s2985_s9 }
  0xb6   : > { %s2987_s20 = scalar_lea.vmem %s2986_s9, 512  ;;  %p2988_p5 = scmp.lt.s32.totalorder %s3411_s23, %s2986_s9 }
  0xb7   : > { %p2983_p6 = pnand %p2981_p1, %p3727_p8  ;;  %p2989_p2 = scmp.lt.s32.totalorder %s2987_s20, %s2980_s1 }
  0xb9   : > { %p2984_p3 = pneg %p2983_p6  ;;  %p2990_p4 = por %p2989_p2, %p2988_p5 }
  0xbb   : > { %p2991_p11 = pnand %p2990_p4, %p2984_p3 }
  0xbd   : > { %2994 = shalt.err (!%p2991_p11)
}
  0xbe   : > { %p3728_p0 = scmp.ne.s32.totalorder %s3719_s19, 0  ;;  %s3446_s25 = scalar_lea.hbm %s3666_s2, %s3310_s18 }
  0xbf   : > { %s382_s30 = scalar_lea.vmem [#allocation7], %s3307_s22  ;;  %s2995_s4 = scalar_lea.hbm %s3446_s25, 256 }
  0xc0   : > { %2697 = dma.hbm_to_vmem [thread:$0]  (!%p3728_p0), %s3408_s21, 256, %s3411_s23, %s3415_s27, %s3723_s29, %s3723_s29, %s3722_s24  }
  0xc1   : > { %s389_s12 = sshll.u32 %s382_s30, 4  ;;  %p2996_p13 = scmp.ne.s32.totalorder %s3446_s25, %s2995_s4  ;;  %s3449_s12 = int_to_ptr.vmem [resolvable:$true] %s389_s12 }
  0xc2   : > { %s3000_s23 = scalar_lea.hbm %s3666_s2, 512  ;;  %p3001_p9 = scmp.lt.u32.totalorder %s3446_s25, %s3666_s2 }
  0xc3   : > { %p2998_p7 = pnand %p2996_p13, %p3727_p8  ;;  %p3002_p12 = scmp.lt.u32.totalorder %s3000_s23, %s2995_s4 }
  0xc4   : > { %p3004_p6 = scmp.lt.u32.totalorder %s2995_s4, %s3446_s25 }
  0xc5   : > { %p2999_p10 = pneg %p2998_p7  ;;  %p3003_p1 = por %p3002_p12, %p3001_p9 }
  0xc7   : > { %p3005_p3 = por %p3004_p6, %p3003_p1 }
  0xc9   : > { %p3006_p5 = pnand %p3005_p3, %p2999_p10 }
  0xcb   : > { %3009 = shalt.err (!%p3006_p5)
}
  0xcc   : > { %s3010_s22 = scalar_lea.vmem %s3449_s12, 256  ;;  %s3113_s1 = smov [#allocation7]  }
  0xcd   : > { %p3011_p2 = scmp.ne.s32.totalorder %s3449_s12, %s3010_s22  ;;  %s3015_s28 = sshll.u32 %s3113_s1, 4  ;;  %s3016_s28 = int_to_ptr.vmem [resolvable:$false] %s3015_s28 }
  0xce   : > { %s3017_s9 = scalar_lea.vmem %s3016_s28, 512  ;;  %p3018_p13 = scmp.lt.s32.totalorder %s3449_s12, %s3016_s28 }
  0xcf   : > { %p3013_p4 = pnand %p3011_p2, %p3727_p8  ;;  %p3019_p7 = scmp.lt.s32.totalorder %s3017_s9, %s3010_s22 }
  0xd1   : > { %p3014_p11 = pneg %p3013_p4  ;;  %p3020_p9 = por %p3019_p7, %p3018_p13 }
  0xd3   : > { %p3021_p12 = pnand %p3020_p9, %p3014_p11 }
  0xd5   : > { %3024 = shalt.err (!%p3021_p12)
}
  0xd6   : > { %2703 = dma.hbm_to_vmem [thread:$0]  (!%p3728_p0), %s3446_s25, 256, %s3449_s12, %s3328_s6, %s3723_s29, %s3723_s29, %s3722_s24  }
  0xd7   : > { %p3729_p8 = scmp.ne.s32.totalorder %s3709_s17, 0 }
  0xd8   : > { %s3479_s16 = sand.u32 (!%p3729_p8), 1, %s3095_s10   ;;  %p3730_p10 = scmp.ne.s32.totalorder (!%p3729_p8), %s3706_s15, 0 }
  0xd9   : > { %401 = sbr.rel (%p3729_p8) target bundleno = 1614 (0x64e), region = 56  ;;  %s3482_s20 = sshll.u32 (!%p3729_p8), %s3479_s16, 4 }
  0xda   : > { %s404_s19 = scalar_lea.sflag (!%p3729_p8), [#allocation3], %s3479_s16  ;;  %s407_s26 = scalar_lea.vmem (!%p3729_p8), [#allocation2], %s3482_s20 }
  0xe0   : > { %3070 = dma.done.wait (%p3730_p10), %s404_s19, 256  }
  0xe1   : > { %3072 = vsyncadd (%p3730_p10), %s404_s19, 4294967040  ;;  %s412_s6 = sand.u32 1, %s3191_s13   ;;  %s416_s24 = scalar_lea.vmem [#allocation5], %s3482_s20 }
  0xe2   : > { %s413_s17 = scalar_lea.sflag [#allocation6], %s412_s6 }
  0xe3   : > { %3074 = dma.done.wait (%p3730_p10), %s413_s17, 512  }
  0xe4   : > { %3076 = vsyncadd (%p3730_p10), %s413_s17, 4294966784  ;;  %s425_s29 = scalar_lea.vmem [#allocation7], %s3482_s20  ;;  %p3731_p0 = scmp.eq.s32.totalorder %s3191_s13, 0 }
  0xe6   : > { %3078 = dma.done.wait (%p3731_p0), [#allocation9], 4096   ;;  %p3732_p1 = pmov %p3731_p0 }
  0xe7   : > { %p3733_p6 = pmov %p3731_p0 }
  0xe8   : > { %3080 = vsyncadd (%p3732_p1), [#allocation9], 4294963200 }
  0xe9   : > { %3082 = dma.done.wait (%p3733_p6), [#allocation12], 4096   ;;  %p3734_p3 = pmov %p3731_p0 }
  0xea   : > { %v492_v0 = vld [vmem:[#allocation8] sm:$0xff]  ;;  %v493_v1 = vld [vmem:[#allocation8 + $0x8] sm:$0xff]  ;;  %v494_v5 = vld [vmem:[#allocation8 + $0x10] sm:$0xff]  ;;  %vm824_vm0 = vcmask 261120   ;;  %s3114_s15 = smov 96   ;;  %s3115_s14 = smov 64  }
  0xeb   : > { %3084 = vsyncadd (%p3734_p3), [#allocation12], 4294963200  ;;  %v583_v2 = vld [vmem:[#allocation10] sm:$0xff]  ;;  %v2483_v3 = vpack.c.bf16 %v493_v1, %v492_v0  ;;  %v584_v4 = vld [vmem:[#allocation10 + $0x8] sm:$0xff]  ;;  %s3116_s25 = smov 32   ;;  %vm1157_vm2 = vcmask 130048  }
  0xec   : > { %v495_v6 = vld [vmem:[#allocation8 + $0x18] sm:$0xff]  ;;  %v2515_v7 = vpack.c.bf16 %v584_v4, %v583_v2  ;;  %v585_v9 = vld [vmem:[#allocation10 + $0x10] sm:$0xff]  ;;  %v496_v11 = vld [vmem:[#allocation8 + $0x20] sm:$0xff]  ;;  %s485_s4 = scalar_lea.vmem [#allocation14], %s3482_s20  ;;  %s3737_s27 = sld [smem:[#allocation29_spill]] }
  0xed   : > { %v2487_v8 = vpack.c.bf16 %v495_v6, %v494_v5  ;;  %v586_v10 = vld [vmem:[#allocation10 + $0x18] sm:$0xff]  ;;  %2484 = vmatprep.subr.bf16.mxu0 %v2483_v3  ;;  %v497_v13 = vld [vmem:[#allocation8 + $0x28] sm:$0xff]  ;;  %v587_v14 = vld [vmem:[#allocation10 + $0x20] sm:$0xff]  ;;  %s1941_s8 = sshll.u32 %s485_s4, 4  ;;  %s3738_s18 = sld [smem:[#allocation24_spill]]  ;;  %s3615_s8 = int_to_ptr.vmem [resolvable:$true] %s1941_s8 }
  0xee   : > { %v2519_v12 = vpack.c.bf16 %v586_v10, %v585_v9  ;;  %v588_v15 = vld [vmem:[#allocation10 + $0x28] sm:$0xff]  ;;  %2516 = vmatprep.subr.bf16.mxu1 %v2515_v7  ;;  %2486 = vmatpush3.bf16.msra.mxu0 %v2483_v3  ;;  %v2491_v16 = vpack.c.bf16 %v497_v13, %v496_v11  ;;  %v498_v18 = vld [vmem:[#allocation8 + $0x30] sm:$0xff]  ;;  %v499_v19 = vld [vmem:[#allocation8 + $0x38] sm:$0xff]  ;;  %s2163_s22 = sshll.u32 %s3191_s13, 8  ;;  %s3739_s9 = sld [smem:[#allocation30_spill]] }
  0xef   : > { %2518 = vmatpush3.bf16.msra.mxu1 %v2515_v7  ;;  %2488 = vmatprep.subr.bf16.mxu0 %v2487_v8  ;;  %v2523_v17 = vpack.c.bf16 %v588_v15, %v587_v14  ;;  %v589_v20 = vld [vmem:[#allocation10 + $0x30] sm:$0xff]  ;;  %v590_v21 = vld [vmem:[#allocation10 + $0x38] sm:$0xff]  ;;  %v2495_v22 = vpack.c.bf16 %v499_v19, %v498_v18  ;;  %v500_v24 = vld [vmem:[#allocation8 + $0x40] sm:$0xff]  ;;  %s1928_s19 = scalar_lea.sflag [#allocation4], %s3479_s16  ;;  %s3117_s13 = smov [#allocation14]  }
  0xf0   : > { %2520 = vmatprep.subr.bf16.mxu1 %v2519_v12  ;;  %v2527_v23 = vpack.c.bf16 %v590_v21, %v589_v20  ;;  %v501_v25 = vld [vmem:[#allocation8 + $0x48] sm:$0xff]  ;;  %v486_v26 = vld [vmem:[%s407_s26] sm:$0xff]  ;;  %v503_v33 = vld [vmem:[#allocation8 + $0x58] sm:$0xff]  ;;  %s3029_s6 = sshll.u32 %s3117_s13, 4  ;;  %s3030_s6 = int_to_ptr.vmem [resolvable:$false] %s3029_s6 }
  0xf1   : > { %v591_v27 = vld [vmem:[#allocation10 + $0x40] sm:$0xff]  ;;  %v592_v28 = vld [vmem:[#allocation10 + $0x48] sm:$0xff]  ;;  %2310 = vmatprep.mubr.f32.mxu0 %v486_v26  ;;  %v2499_v30 = vpack.c.bf16 %v501_v25, %v500_v24  ;;  %v502_v32 = vld [vmem:[#allocation8 + $0x50] sm:$0xff]  ;;  %s3031_s17 = scalar_lea.vmem %s3030_s6, 512  ;;  %p3032_p13 = scmp.lt.s32.totalorder %s3615_s8, %s3030_s6 }
  0xf2   : > { %2490 = vmatpush3.bf16.msra.mxu0 %v2487_v8  ;;  %v488_v29 = vld [vmem:[%s416_s24] sm:$0xff]  ;;  %v2531_v31 = vpack.c.bf16 %v592_v28, %v591_v27  ;;  %v594_v35 = vld [vmem:[#allocation10 + $0x58] sm:$0xff]  ;;  %v2503_v36 = vpack.c.bf16 %v503_v33, %v502_v32  ;;  %v505_v39 = vld [vmem:[#allocation8 + $0x68] sm:$0xff] }
  0xf3   : > { %2522 = vmatpush3.bf16.msra.mxu1 %v2519_v12  ;;  %2492 = vmatprep.subr.bf16.mxu0 %v2491_v16  ;;  %v593_v34 = vld [vmem:[#allocation10 + $0x50] sm:$0xff]  ;;  %v504_v38 = vld [vmem:[#allocation8 + $0x60] sm:$0xff]  ;;  %v596_v41 = vld [vmem:[#allocation10 + $0x68] sm:$0xff]  ;;  %p3740_p2 = scmp.ne.s32.totalorder %s3738_s18, 0 }
  0xf4   : > { %2524 = vmatprep.subr.bf16.mxu1 %v2523_v17  ;;  %2345 = vmatprep.mubr.f32.mxu1 %v488_v29  ;;  %v2535_v37 = vpack.c.bf16 %v594_v35, %v593_v34  ;;  %v595_v40 = vld [vmem:[#allocation10 + $0x60] sm:$0xff]  ;;  %v2507_v42 = vpack.c.bf16 %v505_v39, %v504_v38  ;;  %v506_v44 = vld [vmem:[#allocation8 + $0x70] sm:$0xff]  ;;  %v507_v45 = vld [vmem:[#allocation8 + $0x78] sm:$0xff]  ;;  %s3620_s20 = scalar_lea.hbm %s3739_s9, %s2163_s22 }
  0xf5   : > { %v2539_v43 = vpack.c.bf16 %v596_v41, %v595_v40  ;;  %v597_v46 = vld [vmem:[#allocation10 + $0x70] sm:$0xff]  ;;  %v598_v47 = vld [vmem:[#allocation10 + $0x78] sm:$0xff]  ;;  %v2511_v48 = vpack.c.bf16 %v507_v45, %v506_v44  ;;  %vm3516_vm1 = vmpackc.low %vm824_vm0, %vm824_vm0 }
  0xf6   : > { %2494 = vmatpush3.bf16.msra.mxu0 %v2491_v16  ;;  %v2543_v49 = vpack.c.bf16 %v598_v47, %v597_v46  ;;  %v487_v50 = vld [vmem:[%s407_s26 + $0x8] sm:$0xff]  ;;  %v674_v59 = vld [vmem:[#allocation11] sm:$0xff]  ;;  %v676_v61 = vld [vmem:[#allocation11 + $0x10] sm:$0xff]  ;;  %s3025_s26 = scalar_lea.vmem %s3615_s8, 256 }
  0xf7   : > { %2526 = vmatpush3.bf16.msra.mxu1 %v2523_v17  ;;  %2496 = vmatprep.subr.bf16.mxu0 %v2495_v22  ;;  %v489_v51 = vld [vmem:[%s416_s24 + $0x8] sm:$0xff]  ;;  %v678_v1 = vld [vmem:[#allocation11 + $0x20] sm:$0xff]  ;;  %v680_v5 = vld [vmem:[#allocation11 + $0x30] sm:$0xff]  ;;  %p3026_p5 = scmp.ne.s32.totalorder %s3615_s8, %s3025_s26  ;;  %p3033_p7 = scmp.lt.s32.totalorder %s3031_s17, %s3025_s26 }
  0xf8   : > { %2528 = vmatprep.subr.bf16.mxu1 %v2527_v23  ;;  %v675_v60 = vld [vmem:[#allocation11 + $0x8] sm:$0xff]  ;;  %v677_v63 = vld [vmem:[#allocation11 + $0x18] sm:$0xff]  ;;  %v490_v4 = vld [vmem:[%s425_s29] sm:$0xff] }
  0xf9   : > { %v2547_v62 = vpack.c.bf16 %v675_v60, %v674_v59  ;;  %v2551_v0 = vpack.c.bf16 %v677_v63, %v676_v61  ;;  %v679_v2 = vld [vmem:[#allocation11 + $0x28] sm:$0xff]  ;;  %v681_v6 = vld [vmem:[#allocation11 + $0x38] sm:$0xff]  ;;  %v682_v8 = vld [vmem:[#allocation11 + $0x40] sm:$0xff]  ;;  %p3027_p4 = pnand %p3026_p5, %p3740_p2  ;;  %p3034_p9 = por %p3033_p7, %p3032_p13 }
  0xfa   : > { %2498 = vmatpush3.bf16.msra.mxu0 %v2495_v22  ;;  %v2555_v3 = vpack.c.bf16 %v679_v2, %v678_v1  ;;  %v2559_v7 = vpack.c.bf16 %v681_v6, %v680_v5  ;;  %v683_v9 = vld [vmem:[#allocation11 + $0x48] sm:$0xff]  ;;  %v684_v11 = vld [vmem:[#allocation11 + $0x50] sm:$0xff]  ;;  %v685_v12 = vld [vmem:[#allocation11 + $0x58] sm:$0xff] }
  0xfb   : > { %2530 = vmatpush3.bf16.msra.mxu1 %v2527_v23  ;;  %2500 = vmatprep.subr.bf16.mxu0 %v2499_v30  ;;  %v2563_v10 = vpack.c.bf16 %v683_v9, %v682_v8  ;;  %v2567_v14 = vpack.c.bf16 %v685_v12, %v684_v11  ;;  %v686_v16 = vld [vmem:[#allocation11 + $0x60] sm:$0xff]  ;;  %v687_v17 = vld [vmem:[#allocation11 + $0x68] sm:$0xff]  ;;  %v688_v23 = vld [vmem:[#allocation11 + $0x70] sm:$0xff]  ;;  %p3028_p11 = pneg %p3027_p4 }
  0xfc   : > { %2532 = vmatprep.subr.bf16.mxu1 %v2531_v31  ;;  %v2571_v21 = vpack.c.bf16 %v687_v17, %v686_v16  ;;  %v689_v24 = vld [vmem:[#allocation11 + $0x78] sm:$0xff]  ;;  %v2165_v39 = vld [vmem:[%s3667_s3] sm:$0xf]  }
  0xfd   : > { %v2575_v29 = vpack.c.bf16 %v689_v24, %v688_v23  ;;  %v491_v35 = vld [vmem:[%s425_s29 + $0x8] sm:$0xff]  ;;  %v2167_v40 = vunpack.c.1.s8 %v2165_v39  ;;  %v2166_v41 = vunpack.c.0.s8 %v2165_v39  ;;  %p3035_p12 = pnand %p3034_p9, %p3028_p11 }
  0xfe   : > { %2502 = vmatpush3.bf16.msra.mxu0 %v2499_v30 }
  0xff   : > { %2534 = vmatpush3.bf16.msra.mxu1 %v2531_v31  ;;  %2504 = vmatprep.subr.bf16.mxu0 %v2503_v36 }
 0x100   : > { %2536 = vmatprep.subr.bf16.mxu1 %v2535_v37 }
 0x102   : > { %2506 = vmatpush3.bf16.msra.mxu0 %v2503_v36 }
 0x103   : > { %2538 = vmatpush3.bf16.msra.mxu1 %v2535_v37  ;;  %2508 = vmatprep.subr.bf16.mxu0 %v2507_v42 }
 0x104   : > { %2540 = vmatprep.subr.bf16.mxu1 %v2539_v43 }
 0x106   : > { %2510 = vmatpush3.bf16.msra.mxu0 %v2507_v42  ;;  %v770_v42 = vcvt.s32.f32 %v2167_v40 }
 0x107   : > { %2542 = vmatpush3.bf16.msra.mxu1 %v2539_v43  ;;  %2512 = vmatprep.subr.bf16.mxu0 %v2511_v48  ;;  %v769_v43 = vcvt.s32.f32 %v2166_v41 }
 0x108   : > { %2544 = vmatprep.subr.bf16.mxu1 %v2543_v49  ;;  %v2121_v44 = vadd.f32 -1.0, %v770_v42 }
 0x109   : > { %v2120_v45 = vadd.f32 -1.0, %v769_v43 }
 0x10a   : > { %2514 = vmatpush3.bf16.msra.mxu0 %v2511_v48  ;;  %v774_v46 = vmul.f32 1e+30, %v2121_v44 }
 0x10b   : > { %2546 = vmatpush3.bf16.msra.mxu1 %v2543_v49  ;;  %2548 = vmatprep.subr.bf16.mxu0 %v2547_v62  ;;  %v773_v47 = vmul.f32 1e+30, %v2120_v45 }
 0x10d   : > { %2311 = vmatmul.mubr.f32.vlgmr.msra.gmra.mrb[0].mxu0 %v487_v50 }
 0x10e   : > { %2346 = vmatmul.mubr.f32.vlgmr.msra.gmra.mrb[0].mxu1 %v489_v51  ;;  %2550 = vmatpush3.bf16.msra.mxu0 %v2547_v62 }
 0x10f   : > { %2552 = vmatprep.subr.bf16.mxu0 %v2551_v0  ;;  %2380 = vmatprep.mubr.f32.mxu0 %v490_v4 }
 0x112   : > { %2554 = vmatpush3.bf16.msra.mxu0 %v2551_v0 }
 0x113   : > { %2556 = vmatprep.subr.bf16.mxu0 %v2555_v3 }
 0x116   : > { %2558 = vmatpush3.bf16.msra.mxu0 %v2555_v3 }
 0x117   : > { %2560 = vmatprep.subr.bf16.mxu0 %v2559_v7 }
 0x11a   : > { %2562 = vmatpush3.bf16.msra.mxu0 %v2559_v7 }
 0x11b   : > { %2564 = vmatprep.subr.bf16.mxu0 %v2563_v10 }
 0x11e   : > { %2566 = vmatpush3.bf16.msra.mxu0 %v2563_v10 }
 0x11f   : > { %2568 = vmatprep.subr.bf16.mxu0 %v2567_v14 }
 0x122   : > { %2570 = vmatpush3.bf16.msra.mxu0 %v2567_v14 }
 0x123   : > { %2572 = vmatprep.subr.bf16.mxu0 %v2571_v21 }
 0x126   : > { %2574 = vmatpush3.bf16.msra.mxu0 %v2571_v21 }
 0x127   : > { %2576 = vmatprep.subr.bf16.mxu0 %v2575_v29 }
 0x12a   : > { %2578 = vmatpush3.bf16.msra.mxu0 %v2575_v29 }
 0x12d   : > { %2381 = vmatmul.mubr.f32.vlgmr.msra.gmra.mrb[2].mxu0 %v491_v35 }
 0x1e0   : > { %v2312_v52 = vpop.f32.mrb[0].mxu0 }
 0x1e1   : > { %v2347_v53 = vpop.f32.mrb[0].mxu1  ;;  %v574_v54 = vpop.f32.mrb[1].mxu0 }
 0x1e2   : > { %v665_v55 = vpop.f32.mrb[1].mxu1  ;;  %778 = vrot.lane.b32.xlu1 %v574_v54, %s3114_s15  ;;  %2387 = vmatprep.mubr.msk.f32.mxu1 %vm824_vm0, %v574_v54 }
 0x1e3   : > { %v2579_v57 = vpack.c.bf16 %v2347_v53, %v665_v55  ;;  %v2761_v58 = vpack.i.bf16 %v2347_v53, %v665_v55 }
 0x1e5   : > { %2762 = vrot.lane.b32.xlu0 %v2761_v58, %s3114_s15  ;;  %2581 = vmatprep.subr.msk.bf16.mxu1 %vm3516_vm1, %v2579_v57 }
 0x1e6   : > { %2584 = vmatpush3.bf16.xpose.msk.msra.mxu1 %vm3516_vm1, %v2579_v57  ;;  %780 = vrot.lane.b32.xlu1 %v2312_v52, %s3114_s15 }
 0x1e9   : > { %2767 = vrot.lane.b32.xlu0 %v2761_v58, %s3115_s14 }
 0x1ea   : > { %782 = vrot.lane.b32.xlu1 %v574_v54, %s3115_s14 }
 0x1ed   : > { %2772 = vrot.lane.b32.xlu0 %v2761_v58, %s3116_s25  ;;  %2388 = vmatmul.mubr.msk.f32.vlgmr.msra.gmra.mrb[2].mxu1 %vm824_vm0, %v2312_v52 }
 0x1ee   : > { %786 = vrot.lane.b32.xlu1 %v574_v54, %s3116_s25 }
 0x1f1   : > { %784 = vrot.lane.b32.xlu0 %v2312_v52, %s3115_s14 }
 0x1f5   : > { %788 = vrot.lane.b32.xlu0 %v2312_v52, %s3116_s25 }
 0x254   : > { %v779_v13 = vpop.permute.xlu1 %778 }
 0x255   : > { %2394 = vmatprep.mubr.msk.f32.mxu1 %vm824_vm0, %v779_v13 }
 0x257   : > { %v2763_v15 = vpop.permute.xlu0 %2762 }
 0x258   : > { %v2765_v18 = vunpack.i.h.bf16 %v2763_v15  ;;  %v2764_v19 = vunpack.i.l.bf16 %v2763_v15  ;;  %v781_v27 = vpop.permute.xlu1 %780 }
 0x25a   : > { %v2585_v20 = vpack.c.bf16 %v2765_v18, %v2764_v19  ;;  %v2382_v18 = vpop.f32.mrb[2].mxu0 }
 0x25b   : > { %v2768_v22 = vpop.permute.xlu0 %2767  ;;  %v756_v19 = vpop.f32.mrb[3].mxu0 }
 0x25c   : > { %v2770_v25 = vunpack.i.h.bf16 %v2768_v22  ;;  %v2769_v26 = vunpack.i.l.bf16 %v2768_v22  ;;  %2587 = vmatprep.subr.msk.bf16.mxu1 %vm3516_vm1, %v2585_v20  ;;  %v783_v33 = vpop.permute.xlu1 %782  ;;  %v2781_v21 = vpack.i.bf16 %v2382_v18, %v756_v19 }
 0x25d   : > { %2590 = vmatpush3.bf16.xpose.msk.msra.mxu1 %vm3516_vm1, %v2585_v20  ;;  %v2603_v20 = vpack.c.bf16 %v2382_v18, %v756_v19 }
 0x25e   : > { %v2591_v28 = vpack.c.bf16 %v2770_v25, %v2769_v26 }
 0x25f   : > { %v2773_v30 = vpop.permute.xlu0 %2772  ;;  %2604 = vmatprep.subr.bf16.mxu0 %v2603_v20 }
 0x260   : > { %v2775_v31 = vunpack.i.h.bf16 %v2773_v30  ;;  %v2774_v32 = vunpack.i.l.bf16 %v2773_v30  ;;  %2593 = vmatprep.subr.msk.bf16.mxu1 %vm3516_vm1, %v2591_v28  ;;  %v787_v37 = vpop.permute.xlu1 %786  ;;  %2606 = vmatpush3.bf16.msra.mxu0 %v2603_v20  ;;  %v1575_v20 = vld [vmem:[#allocation13 + $0x20] sm:$0xff] }
 0x262   : > { %v2597_v34 = vpack.c.bf16 %v2775_v31, %v2774_v32 }
 0x263   : > { %v785_v36 = vpop.permute.xlu0 %784 }
 0x264   : > { %2395 = vmatmul.mubr.msk.f32.vlgmr.msra.gmra.mrb[4].mxu1 %vm824_vm0, %v781_v27 }
 0x265   : > { %2596 = vmatpush3.bf16.xpose.msk.msra.mxu1 %vm3516_vm1, %v2591_v28  ;;  %2401 = vmatprep.mubr.msk.f32.mxu1 %vm824_vm0, %v783_v33 }
 0x266   : > { %2599 = vmatprep.subr.msk.bf16.mxu1 %vm3516_vm1, %v2597_v34 }
 0x267   : > { %v789_v38 = vpop.permute.xlu0 %788 }
 0x26c   : > { %2402 = vmatmul.mubr.msk.f32.vlgmr.msra.gmra.mrb[6].mxu1 %vm824_vm0, %v785_v36 }
 0x26d   : > { %2602 = vmatpush3.bf16.xpose.msk.msra.mxu1 %vm3516_vm1, %v2597_v34  ;;  %2408 = vmatprep.mubr.msk.f32.mxu1 %vm824_vm0, %v787_v37 }
 0x274   : > { %2409 = vmatmul.mubr.msk.f32.vlgmr.msra.gmra.mrb[8].mxu1 %vm824_vm0, %v789_v38 }
 0x2c0   : > { %v2389_v48 = vpop.f32.mrb[2].mxu1 }
 0x2c1   : > { %v905_v49 = vadd.f32 %v2389_v48, %v774_v46  ;;  %v899_v50 = vpop.f32.mrb[3].mxu1 }
 0x2c2   : > { %v900_v51 = vadd.f32 %v899_v50, %v773_v47 }
 0x2c3   : > { %v1161_v52 = vsel %vm1157_vm2, %v905_v49, -inf }
 0x2c4   : > { %1162 = vmax.xlane.f32.xlu0 %v1161_v52  ;;  %v1158_v53 = vsel %vm1157_vm2, %v900_v51, -inf }
 0x2c5   : > { %1159 = vmax.xlane.f32.xlu1 %v1158_v53 }
 0x337   : > { %v2396_v54 = vpop.f32.mrb[4].mxu1 }
 0x338   : > { %v982_v55 = vpop.f32.mrb[5].mxu1  ;;  %v988_v57 = vadd.f32 %v2396_v54, %v774_v46 }
 0x339   : > { %v983_v56 = vadd.f32 %v982_v55, %v773_v47 }
 0x33a   : > { %v1167_v60 = vsel %vm1157_vm2, %v988_v57, -inf }
 0x33b   : > { %v1164_v58 = vsel %vm1157_vm2, %v983_v56, -inf }
 0x33c   : > { %1165 = vmax.xlane.f32.xlu0 %v1164_v58 }
 0x33f   : > { %v2403_v59 = vpop.f32.mrb[6].mxu1 }
 0x340   : > { %v1065_v61 = vpop.f32.mrb[7].mxu1  ;;  %1168 = vmax.xlane.f32.xlu0 %v1167_v60  ;;  %v1071_v63 = vadd.f32 %v2403_v59, %v774_v46 }
 0x341   : > { %v1066_v62 = vadd.f32 %v1065_v61, %v773_v47 }
 0x342   : > { %v1173_v2 = vsel %vm1157_vm2, %v1071_v63, -inf }
 0x343   : > { %v1170_v0 = vsel %vm1157_vm2, %v1066_v62, -inf }
 0x344   : > { %1171 = vmax.xlane.f32.xlu1 %v1170_v0 }
 0x347   : > { %v2410_v1 = vpop.f32.mrb[8].mxu1 }
 0x348   : > { %v1154_v3 = vadd.f32 %v2410_v1, %v774_v46  ;;  %v1148_v4 = vpop.f32.mrb[9].mxu1  ;;  %1174 = vmax.xlane.f32.xlu1 %v1173_v2 }
 0x349   : > { %v1149_v5 = vadd.f32 %v1148_v4, %v773_v47 }
 0x34a   : > { %v1179_v6 = vsel %vm1157_vm2, %v1154_v3, -inf }
 0x34b   : > { %v1176_v7 = vsel %vm1157_vm2, %v1149_v5, -inf }
 0x34c   : > { %1177 = vmax.xlane.f32.xlu0 %v1176_v7  ;;  %1180 = vmax.xlane.f32.xlu1 %v1179_v6 }
 0x351   : > { %v1163_v8 = vpop.xlane.xlu0 %1162 }
 0x352   : > { %v1183_v9 = vsub.f32 %v905_v49, %v1163_v8  ;;  %v1160_v10 = vpop.xlane.xlu1 %1159  ;;  %v1742_v8 = vld [vmem:[#allocation13 + $0x40] sm:$0xff] }
 0x353   : > { %v1182_v11 = vsub.f32 %v900_v51, %v1160_v10 }
 0x354   : > { %v1192_v12 = vmul.f32 1.442695, %v1183_v9  ;;  %v1743_v9 = vld [vmem:[#allocation13 + $0x48] sm:$0xff] }
 0x355   : > { %v1190_v13 = vmul.f32 1.442695, %v1182_v11 }
 0x356   : > { %2791 = vpow2.f32 %v1192_v12 }
 0x357   : > { %2793 = vpow2.f32 %v1190_v13 }
 0x360   : > { %v2792_v14 = vpop.eup %2791 }
 0x361   : > { %v2794_v15 = vpop.eup %2793  ;;  %v1209_v16 = vsel %vm1157_vm2, %v2792_v14, 0.0 }
 0x362   : > { %1210 = vadd.xlane.f32.xlu1 %v1209_v16  ;;  %v1206_v17 = vsel %vm1157_vm2, %v2794_v15, 0.0  ;;  %v2635_v16 = vpack.c.bf16 %v1743_v9, %v1742_v8 }
 0x363   : > { %1207 = vadd.xlane.f32.xlu0 %v1206_v17 }
 0x3c9   : > { %v1166_v22 = vpop.xlane.xlu0 %1165 }
 0x3ca   : > { %v1184_v23 = vsub.f32 %v983_v56, %v1166_v22 }
 0x3cc   : > { %v1194_v26 = vmul.f32 1.442695, %v1184_v23 }
 0x3cd   : > { %v1169_v24 = vpop.xlane.xlu0 %1168 }
 0x3ce   : > { %v1185_v25 = vsub.f32 %v988_v57, %v1169_v24 }
 0x3d0   : > { %v1196_v27 = vmul.f32 1.442695, %v1185_v25 }
 0x3d1   : > { %v1172_v28 = vpop.xlane.xlu1 %1171 }
 0x3d2   : > { %2795 = vpow2.f32 %v1196_v27  ;;  %v1186_v29 = vsub.f32 %v1066_v62, %v1172_v28 }
 0x3d3   : > { %2797 = vpow2.f32 %v1194_v26 }
 0x3d4   : > { %v1198_v32 = vmul.f32 1.442695, %v1186_v29  ;;  %v1577_v29 = vld [vmem:[#allocation13 + $0x30] sm:$0xff] }
 0x3d5   : > { %v1175_v30 = vpop.xlane.xlu1 %1174 }
 0x3d6   : > { %v1187_v31 = vsub.f32 %v1071_v63, %v1175_v30  ;;  %v1578_v30 = vld [vmem:[#allocation13 + $0x38] sm:$0xff] }
 0x3d8   : > { %v1200_v33 = vmul.f32 1.442695, %v1187_v31 }
 0x3d9   : > { %v1178_v34 = vpop.xlane.xlu0 %1177  ;;  %v1181_v35 = vpop.xlane.xlu1 %1180 }
 0x3da   : > { %2799 = vpow2.f32 %v1200_v33  ;;  %v1188_v36 = vsub.f32 %v1149_v5, %v1178_v34  ;;  %v1189_v37 = vsub.f32 %v1154_v3, %v1181_v35  ;;  %v1570_v35 = vld [vmem:[#allocation13] sm:$0xff] }
 0x3db   : > { %2801 = vpow2.f32 %v1198_v32  ;;  %v2623_v32 = vpack.c.bf16 %v1578_v30, %v1577_v29 }
 0x3dc   : > { %v3569_v38 = vpop.eup %2795  ;;  %v1202_v39 = vmul.f32 1.442695, %v1188_v36  ;;  %v1204_v40 = vmul.f32 1.442695, %v1189_v37  ;;  %v1571_v36 = vld [vmem:[#allocation13 + $0x8] sm:$0xff]  ;;  %v1744_v37 = vld [vmem:[#allocation13 + $0x50] sm:$0xff] }
 0x3dd   : > { %v1215_v41 = vsel %vm1157_vm2, %v3569_v38, 0.0  ;;  %v2798_v42 = vpop.eup %2797 }
 0x3de   : > { %2803 = vpow2.f32 %v1202_v39  ;;  %1216 = vadd.xlane.f32.xlu0 %v1215_v41  ;;  %v1212_v43 = vsel %vm1157_vm2, %v2798_v42, 0.0  ;;  %v1745_v39 = vld [vmem:[#allocation13 + $0x58] sm:$0xff]  ;;  %v1830_v41 = vld [vmem:[#allocation13 + $0x60] sm:$0xff] }
 0x3df   : > { %2805 = vpow2.f32 %v1204_v40  ;;  %v2639_v40 = vpack.c.bf16 %v1745_v39, %v1744_v37 }
 0x3e2   : > { %1213 = vadd.xlane.f32.xlu0 %v1212_v43 }
 0x3e4   : > { %v3574_v44 = vpop.eup %2799 }
 0x3e5   : > { %v1221_v45 = vsel %vm1157_vm2, %v3574_v44, 0.0  ;;  %v3578_v46 = vpop.eup %2801 }
 0x3e6   : > { %1222 = vadd.xlane.f32.xlu1 %v1221_v45  ;;  %v1218_v49 = vsel %vm1157_vm2, %v3578_v46, 0.0  ;;  %v1573_v45 = vld [vmem:[#allocation13 + $0x18] sm:$0xff] }
 0x3e8   : > { %v2804_v47 = vpop.eup %2803 }
 0x3e9   : > { %v1224_v48 = vsel %vm1157_vm2, %v2804_v47, 0.0  ;;  %v3583_v50 = vpop.eup %2805 }
 0x3ea   : > { %1225 = vadd.xlane.f32.xlu0 %v1224_v48  ;;  %1219 = vadd.xlane.f32.xlu1 %v1218_v49  ;;  %v1227_v51 = vsel %vm1157_vm2, %v3583_v50, 0.0  ;;  %v1832_v49 = vld [vmem:[#allocation13 + $0x70] sm:$0xff] }
 0x3ee   : > { %1228 = vadd.xlane.f32.xlu1 %v1227_v51 }
 0x3ef   : > { %v1211_v52 = vpop.xlane.xlu1 %1210 }
 0x3f0   : > { %2807 = vrcp.f32 %v1211_v52  ;;  %v1208_v53 = vpop.xlane.xlu0 %1207 }
 0x3f1   : > { %2809 = vrcp.f32 %v1208_v53 }
 0x3fa   : > { %v2808_v54 = vpop.eup %2807 }
 0x3fb   : > { %v2810_v55 = vpop.eup %2809  ;;  %v1239_v57 = vmul.f32 %v2808_v54, %v2792_v14 }
 0x3fc   : > { %v1238_v56 = vmul.f32 %v2810_v55, %v2794_v15 }
 0x3fe   : > { %2415 = vmatprep.mubr.msk.f32.mxu0 %vm1157_vm2, %v1238_v56 }
 0x3ff   : > { %2416 = vmatmul.mubr.msk.f32.vlgmr.msra.gmra.mrb[4].mxu0 %vm1157_vm2, %v1239_v57  ;;  %2782 = vrot.lane.b32.xlu1 %v2781_v21, %s3115_s14 }
 0x400   : > { %2777 = vrot.lane.b32.xlu0 %v2781_v21, %s3114_s15 }
 0x403   : > { %2787 = vrot.lane.b32.xlu1 %v2781_v21, %s3116_s25  ;;  %v1576_v21 = vld [vmem:[#allocation13 + $0x28] sm:$0xff] }
 0x404   : > { %v2619_v27 = vpack.c.bf16 %v1576_v21, %v1575_v20 }
 0x46b   : > { %v1217_v58 = vpop.xlane.xlu0 %1216 }
 0x46f   : > { %v1214_v59 = vpop.xlane.xlu0 %1213 }
 0x470   : > { %2811 = vrcp.f32 %v1214_v59 }
 0x471   : > { %2813 = vrcp.f32 %v1217_v58  ;;  %v2154_v58 = vld [vmem:[%s3737_s27] ss:$0 sm:$0xff] }
 0x473   : > { %v1223_v60 = vpop.xlane.xlu1 %1222 }
 0x474   : > { %2815 = vrcp.f32 %v1223_v60 }
 0x477   : > { %v1226_v61 = vpop.xlane.xlu0 %1225  ;;  %v1220_v62 = vpop.xlane.xlu1 %1219 }
 0x478   : > { %2817 = vrcp.f32 %v1226_v61 }
 0x479   : > { %2819 = vrcp.f32 %v1220_v62 }
 0x47a   : > { %v2812_v63 = vpop.eup %2811 }
 0x47b   : > { %v1229_v0 = vpop.xlane.xlu1 %1228  ;;  %v2778_v1 = vpop.permute.xlu0 %2777  ;;  %v1240_v2 = vmul.f32 %v2812_v63, %v2798_v42  ;;  %v1831_v42 = vld [vmem:[#allocation13 + $0x68] sm:$0xff] }
 0x47c   : > { %v2780_v3 = vunpack.i.h.bf16 %v2778_v1  ;;  %v2779_v4 = vunpack.i.l.bf16 %v2778_v1  ;;  %2821 = vrcp.f32 %v1229_v0  ;;  %v2814_v6 = vpop.eup %2813  ;;  %v2643_v43 = vpack.c.bf16 %v1831_v42, %v1830_v41 }
 0x47d   : > { %2422 = vmatprep.mubr.msk.f32.mxu1 %vm1157_vm2, %v1240_v2  ;;  %v1241_v14 = vmul.f32 %v2814_v6, %v3569_v38  ;;  %v2627_v38 = vpack.c.bf16 %v1571_v36, %v1570_v35 }
 0x47e   : > { %v2607_v5 = vpack.c.bf16 %v2780_v3, %v2779_v4  ;;  %v2816_v12 = vpop.eup %2815 }
 0x47f   : > { %v2783_v7 = vpop.permute.xlu1 %2782  ;;  %v1243_v25 = vmul.f32 %v2816_v12, %v3574_v44  ;;  %v1572_v44 = vld [vmem:[#allocation13 + $0x10] sm:$0xff] }
 0x480   : > { %v2785_v10 = vunpack.i.h.bf16 %v2783_v7  ;;  %v2784_v11 = vunpack.i.l.bf16 %v2783_v7  ;;  %2608 = vmatprep.subr.bf16.mxu1 %v2607_v5  ;;  %v2631_v48 = vpack.c.bf16 %v1573_v45, %v1572_v44 }
 0x481   : > { %2610 = vmatpush3.bf16.msra.mxu1 %v2607_v5 }
 0x482   : > { %v2818_v13 = vpop.eup %2817  ;;  %v2611_v15 = vpack.c.bf16 %v2785_v10, %v2784_v11 }
 0x483   : > { %v2820_v17 = vpop.eup %2819  ;;  %v2788_v18 = vpop.permute.xlu1 %2787  ;;  %v1244_v19 = vmul.f32 %v2818_v13, %v2804_v47 }
 0x484   : > { %v2790_v22 = vunpack.i.h.bf16 %v2788_v18  ;;  %v2789_v23 = vunpack.i.l.bf16 %v2788_v18  ;;  %2423 = vmatmul.mubr.msk.f32.vlgmr.msra.gmra.mrb[10].mxu1 %vm1157_vm2, %v1241_v14  ;;  %2612 = vmatprep.subr.bf16.mxu0 %v2611_v15  ;;  %v1242_v24 = vmul.f32 %v2820_v17, %v3578_v46 }
 0x485   : > { %2614 = vmatpush3.bf16.msra.mxu0 %v2611_v15  ;;  %2436 = vmatprep.mubr.msk.f32.mxu1 %vm1157_vm2, %v1244_v19 }
 0x486   : > { %v2615_v26 = vpack.c.bf16 %v2790_v22, %v2789_v23  ;;  %2429 = vmatprep.mubr.msk.f32.mxu0 %vm1157_vm2, %v1242_v24  ;;  %2636 = vmatprep.subr.bf16.mxu0 %v2635_v16  ;;  %v2822_v28 = vpop.eup %2821 }
 0x487   : > { %v1245_v31 = vmul.f32 %v2822_v28, %v3583_v50  ;;  %v1833_v50 = vld [vmem:[#allocation13 + $0x78] sm:$0xff] }
 0x488   : > { %2430 = vmatmul.mubr.msk.f32.vlgmr.msra.gmra.mrb[6].mxu0 %vm1157_vm2, %v1243_v25  ;;  %2616 = vmatprep.subr.bf16.mxu1 %v2615_v26  ;;  %v2647_v53 = vpack.c.bf16 %v1833_v50, %v1832_v49 }
 0x489   : > { %2618 = vmatpush3.bf16.msra.mxu1 %v2615_v26  ;;  %2638 = vmatpush3.bf16.msra.mxu0 %v2635_v16 }
 0x48a   : > { %2620 = vmatprep.subr.bf16.mxu1 %v2619_v27  ;;  %2640 = vmatprep.subr.bf16.mxu0 %v2639_v40 }
 0x48c   : > { %2437 = vmatmul.mubr.msk.f32.vlgmr.msra.gmra.mrb[12].mxu1 %vm1157_vm2, %v1245_v31 }
 0x48d   : > { %2622 = vmatpush3.bf16.msra.mxu1 %v2619_v27  ;;  %2642 = vmatpush3.bf16.msra.mxu0 %v2639_v40 }
 0x48e   : > { %2624 = vmatprep.subr.bf16.mxu1 %v2623_v32  ;;  %2644 = vmatprep.subr.bf16.mxu0 %v2643_v43 }
 0x491   : > { %2626 = vmatpush3.bf16.msra.mxu1 %v2623_v32 }
 0x492   : > { %2628 = vmatprep.subr.bf16.mxu1 %v2627_v38 }
 0x4d2   : > { %v2417_v33 = vpop.f32.mrb[4].mxu0 }
 0x4d3   : > { %v1318_v34 = vpop.f32.mrb[5].mxu0 }
 0x557   : > { %v2424_v46 = vpop.f32.mrb[10].mxu1 }
 0x558   : > { %v1399_v47 = vpop.f32.mrb[11].mxu1 }
 0x559   : > { %2447 = vmatprep.mubr.msk.f32.mxu1 %vm824_vm0, %v1399_v47 }
 0x55a   : > { %2448 = vmatmul.mubr.msk.f32.vlgmr.msra.gmra.mrb[14].mxu1 %vm824_vm0, %v2424_v46 }
 0x55b   : > { %v2431_v51 = vpop.f32.mrb[6].mxu0  ;;  %2630 = vmatpush3.bf16.msra.mxu1 %v2627_v38  ;;  %2458 = vmatprep.mubr.msk.f32.mxu1 %vm824_vm0, %v1318_v34 }
 0x55c   : > { %v1480_v52 = vpop.f32.mrb[7].mxu0  ;;  %2632 = vmatprep.subr.bf16.mxu1 %v2631_v48 }
 0x55d   : > { %2469 = vmatprep.mubr.msk.f32.mxu0 %vm824_vm0, %v1480_v52 }
 0x55e   : > { %2470 = vmatmul.mubr.msk.f32.vlgmr.msra.gmra.mrb[8].mxu0 %vm824_vm0, %v2431_v51 }
 0x55f   : > { %v2438_v54 = vpop.f32.mrb[12].mxu1  ;;  %2634 = vmatpush3.bf16.msra.mxu1 %v2631_v48  ;;  %2646 = vmatpush3.bf16.msra.mxu0 %v2643_v43 }
 0x560   : > { %v1561_v55 = vpop.f32.mrb[13].mxu1  ;;  %2648 = vmatprep.subr.bf16.mxu0 %v2647_v53 }
 0x561   : > { %2480 = vmatprep.mubr.msk.f32.mxu0 %vm824_vm0, %v1561_v55 }
 0x562   : > { %2459 = vmatmul.mubr.msk.f32.vlgmr.msra.gmra.mrb[14].mxu1 %vm824_vm0, %v2417_v33 }
 0x563   : > { %2650 = vmatpush3.bf16.msra.mxu0 %v2647_v53 }
 0x566   : > { %2481 = vmatmul.mubr.msk.f32.vlgmr.msra.gmra.mrb[8].mxu0 %vm824_vm0, %v2438_v54 }
 0x635   : > { %v2460_v56 = vpop.f32.mrb[14].mxu1 }
 0x636   : > { %v1732_v57 = vpop.f32.mrb[15].mxu1 }
 0x639   : > { %v2482_v59 = vpop.f32.mrb[8].mxu0 }
 0x63a   : > { %v2651_v60 = vadd.f32 %v2482_v59, %v2460_v56  ;;  %v1906_v61 = vpop.f32.mrb[9].mxu0 }
 0x63b   : > { %v2652_v62 = vadd.f32 %v1906_v61, %v1732_v57 }
 0x63c   : > { %v1924_v63 = vadd.f32 %v2651_v60, %v2154_v58 }
 0x63d   : > { %v1923_v0 = vadd.f32 %v2652_v62, %v2154_v58 }
 0x63e   : > { %1926 = vst [vmem:[%s485_s4 + $0x8] sm:$0xff] %v1924_v63 }
 0x63f   : > { %1925 = vst [vmem:[%s485_s4] sm:$0xff] %v1923_v0 }
 0x640   : > { %3038 = shalt.err (!%p3035_p12)
}
 0x641   : > { %s3039_s24 = scalar_lea.hbm %s3620_s20, 256  ;;  %s3043_s14 = scalar_lea.hbm %s3739_s9, 512 }
 0x642   : > { %p3040_p8 = scmp.ne.s32.totalorder %s3620_s20, %s3039_s24  ;;  %p3044_p1 = scmp.lt.u32.totalorder %s3620_s20, %s3739_s9 }
 0x643   : > { %p3045_p6 = scmp.lt.u32.totalorder %s3043_s14, %s3039_s24  ;;  %p3047_p5 = scmp.lt.u32.totalorder %s3039_s24, %s3620_s20 }
 0x644   : > { %p3041_p10 = pnand %p3040_p8, %p3740_p2 }
 0x645   : > { %p3046_p3 = por %p3045_p6, %p3044_p1 }
 0x646   : > { %p3042_p0 = pneg %p3041_p10 }
 0x647   : > { %p3048_p4 = por %p3047_p5, %p3046_p3 }
 0x649   : > { %p3049_p11 = pnand %p3048_p4, %p3042_p0 }
 0x64b   : > { %3052 = shalt.err (!%p3049_p11)
}
 0x64c   : > { %s3118_s12 = smov 128   ;;  %s3119_s4 = smov 8  }
 0x64d   : > { %2679 = dma.vmem_to_hbm [thread:$0]  (%p3740_p2), %s3615_s8, 256, %s3620_s20, %s1928_s19, %s3118_s12, %s3118_s12, %s3119_s4  }
 0x64e PF: > { %s3741_s21 = sld [smem:[#allocation20_spill]]  ;;  %s3742_s23 = sld [smem:[#allocation22_spill]] }
 0x64f   : > { %s3743_s27 = sld [smem:[#allocation21_spill]] }
 0x654   : > { %s1956_s22 = sand.u32 1, %s3741_s21   ;;  %p3744_p13 = scmp.ne.s32.totalorder %s3742_s23, 0 }
 0x655   : > { %p3745_p7 = scmp.ge.s32.totalorder %s3743_s27, 2  ;;  %s1957_s1 = scalar_lea.sflag [#allocation4], %s1956_s22 }
 0x657   : > { %p2705_p9 = pnand %p3745_p7, %p3744_p13 }
 0x659   : > { %3086 = dma.done.wait (!%p2705_p9), %s1957_s1, 256  }
 0x65a   : > { %3088 = vsyncadd (!%p2705_p9), %s1957_s1, 4294967040  ;;  %s3746_s12 = sld [smem:[#allocation23_spill]]  ;;  %s3747_s28 = sld [smem:[#allocation25_spill]] }
 0x65b   : > { %s3748_s30 = smov %s3095_s10  ;;  %s3749_s10 = smov %s3099_s11 }
 0x660   : > { %p27_p12 = scmp.ge.s32.totalorder %s3746_s12, 4   ;;  %s3750_s11 = smov %s3747_s28 }
 0x662   :  { %29 = sbr.rel (!%p27_p12) target bundleno = 15 (0xf), region = 144 }
 0x669   :  { %1962 = vsyncpa [#allocation3], 1 }
 0x66a   :  { %1964 = vsyncpa [#allocation3 + $0x1], 1 }
 0x66b   :  { %1965 = vsyncpa [#allocation6], 1 }
 0x66c   :  { %1967 = vsyncpa [#allocation6 + $0x1], 1 }
 0x66d   :  { %1968 = vsyncpa [#allocation9], 1 }
 0x66e   :  { %1969 = vsyncpa [#allocation12], 1 }
 0x66f   :  { %1970 = vsyncpa [#allocation4], 1 }
 0x670   :  { %1972 = vsyncpa [#allocation4 + $0x1], 1 }

</bundles_post_ra>
